<compile_context>
chip_gen: v5e
topology: v5e:2x2
jax: 0.10.0
libtpu: 0.0.40
codegen_flags: <defaults>
</compile_context>

<pallas_src>
import math
import functools

import jax
import jax.numpy as jnp
from jax import lax
from jax.experimental import pallas as pl
from jax.experimental.pallas import tpu as pltpu

_NEG_BIG = -1e30          # large finite negative for masked logits


def _default_vmem_limit():
    """~75% of the per-core VMEM (96 MiB on v5e/v6e, 48 MiB on v7x), capped."""
    try:
        cap = int(pltpu.get_tpu_info().vmem_capacity_bytes)
    except Exception:
        cap = 64 * 1024 * 1024          # conservative (v7x per-TC size)
    return min((cap * 3) // 4, 96 * 1024 * 1024)


_VMEM_LIMIT = _default_vmem_limit()


def _pick_tile(total, preferred):
    """Largest standard tile <= preferred that divides `total` (else `total`)."""
    for t in (preferred, 1024, 512, 256, 128, 64, 32, 16, 8):
        if t <= total and total % t == 0:
            return t
    return total


# ----------------------------------------------------------------------------
# Row/column-tiled linear(s): one x tile, n_out independent (K, N) weights.
# Used with n_out=3 for the fused c_attn (emits q, k, v separately, already in
# the layout the attention kernel wants) and n_out=1 for c_proj.
# ----------------------------------------------------------------------------
def _make_linear_kernel(n_out):
    def kernel(*refs):
        x_ref = refs[0]
        w_refs = refs[1:1 + 2 * n_out:2]
        b_refs = refs[2:2 + 2 * n_out:2]
        o_refs = refs[1 + 2 * n_out:1 + 3 * n_out]
        x = x_ref[...]                                    # native dtype into MXU
        for w_ref, b_ref, o_ref in zip(w_refs, b_refs, o_refs):
            acc = jnp.dot(x, w_ref[...], preferred_element_type=jnp.float32)
            o_ref[...] = (acc + b_ref[...].astype(jnp.float32)).astype(o_ref.dtype)
    return kernel


def _linear(x2d, weights_biases, *, row_tile=512, col_tile=512):
    """x2d: (M, K); weights_biases: sequence of ((K, N), (1, N)) pairs."""
    M, K = x2d.shape
    n_out = len(weights_biases)
    N = weights_biases[0][0].shape[1]
    for w, b in weights_biases:
        assert w.shape == (K, N) and b.shape == (1, N)

    tm = _pick_tile(M, row_tile)
    tn = _pick_tile(N, col_tile)

    x_spec = pl.BlockSpec((tm, K), lambda i, j: (i, 0))   # re-used across j (no re-DMA)
    w_spec = pl.BlockSpec((K, tn), lambda i, j: (0, j))   # weights streamed over N
    b_spec = pl.BlockSpec((1, tn), lambda i, j: (0, j))
    o_spec = pl.BlockSpec((tm, tn), lambda i, j: (i, j))  # lane-dense output tile

    in_specs, operands = [x_spec], [x2d]
    for w, b in weights_biases:
        in_specs += [w_spec, b_spec]
        operands += [w, b]

    outs = pl.pallas_call(
        _make_linear_kernel(n_out),
        out_shape=tuple(jax.ShapeDtypeStruct((M, N), x2d.dtype) for _ in range(n_out)),
        grid_spec=pltpu.PrefetchScalarGridSpec(
            num_scalar_prefetch=0,
            grid=(M // tm, N // tn),
            in_specs=in_specs,
            out_specs=tuple(o_spec for _ in range(n_out)),
        ),
        compiler_params=pltpu.CompilerParams(
            dimension_semantics=("parallel", "arbitrary"),
            vmem_limit_bytes=_VMEM_LIMIT,
        ),
    )(*operands)
    if not isinstance(outs, (list, tuple)):
        outs = (outs,)
    return tuple(outs)


# ----------------------------------------------------------------------------
# Flash attention over a flattened lower-triangular (q_tile, kv_tile) pair grid.
#   grid = (B, n_pairs); scalar-prefetched qi/ki tables drive the index_maps,
#   so only causally relevant blocks are ever fetched or computed.
#   Inputs q/k/v: (B, T, C) (no head transpose); output: (B, T, C) slab per q tile.
# ----------------------------------------------------------------------------
def _flash_attn_kernel(qi_ref, ki_ref, q_ref, k_ref, v_ref, o_ref,
                       m_sc, l_sc, acc_sc, *, n_head, hd, tq, tk):
    pair = pl.program_id(1)
    qi = qi_ref[pair]
    ki = ki_ref[pair]

    @pl.when(ki == 0)                      # first kv block of this q tile
    def _init():
        m_sc[...] = jnp.full_like(m_sc, -jnp.inf)
        l_sc[...] = jnp.zeros_like(l_sc)
        acc_sc[...] = jnp.zeros_like(acc_sc)

    # Causal mask for this tile pair (only the diagonal tile is ever partially
    # masked; the where is cheap VPU work shared by all heads).
    row = lax.broadcasted_iota(jnp.int32, (tq, tk), 0) + qi * tq
    col = lax.broadcasted_iota(jnp.int32, (tq, tk), 1) + ki * tk
    causal = row >= col

    q_all = q_ref[0]                       # (tq, C); 1/sqrt(hd) folded into weights
    k_all = k_ref[0]                       # (tk, C)
    v_all = v_ref[0]                       # (tk, C)

    for h in range(n_head):                # static unroll over heads
        sl = slice(h * hd, (h + 1) * hd)
        qh = q_all[:, sl]
        kh = k_all[:, sl]
        vh = v_all[:, sl]

        # QK^T contracting on head_dim without materializing kh.T
        s = lax.dot_general(qh, kh, (((1,), (1,)), ((), ())),
                            preferred_element_type=jnp.float32)       # (tq, tk)
        s = jnp.where(causal, s, _NEG_BIG)

        # online softmax update (f32 statistics per head)
        m_prev = m_sc[h]
        m_new = jnp.maximum(m_prev, s.max(axis=-1, keepdims=True))
        alpha = jnp.exp(m_prev - m_new)
        p = jnp.exp(s - m_new)
        l_sc[h] = alpha * l_sc[h] + p.sum(axis=-1, keepdims=True)
        acc_sc[h] = alpha * acc_sc[h] + jnp.dot(
            p.astype(vh.dtype), vh, preferred_element_type=jnp.float32)
        m_sc[h] = m_new

    @pl.when(ki == qi)                     # last causally relevant kv block
    def _finalize():
        for h in range(n_head):
            inv_l = pl.reciprocal(l_sc[h])                # exact; once per q tile
            o_ref[0, :, h * hd:(h + 1) * hd] = (acc_sc[h] * inv_l).astype(o_ref.dtype)


def _flash_attention(q, k, v, *, n_head, q_tile=256):
    B, T, C = q.shape
    assert C % n_head == 0
    hd = C // n_head
    tq = _pick_tile(T, q_tile)
    tk = tq                                # square tiles: simple causal pairing
    nq = T // tq

    # Enumerate only the lower-triangular (qi, ki) tile pairs.
    qi_list, ki_list = [], []
    for qi in range(nq):
        for ki in range(qi + 1):
            qi_list.append(qi)
            ki_list.append(ki)
    qi_tab = jnp.asarray(qi_list, dtype=jnp.int32)
    ki_tab = jnp.asarray(ki_list, dtype=jnp.int32)
    n_pairs = len(qi_list)

    kernel = functools.partial(_flash_attn_kernel, n_head=n_head, hd=hd, tq=tq, tk=tk)

    return pl.pallas_call(
        kernel,
        out_shape=jax.ShapeDtypeStruct((B, T, C), q.dtype),
        grid_spec=pltpu.PrefetchScalarGridSpec(
            num_scalar_prefetch=2,         # qi table, ki table (SMEM)
            grid=(B, n_pairs),
            in_specs=[
                pl.BlockSpec((1, tq, C), lambda b, p, qi_t, ki_t: (b, qi_t[p], 0)),
                pl.BlockSpec((1, tk, C), lambda b, p, qi_t, ki_t: (b, ki_t[p], 0)),
                pl.BlockSpec((1, tk, C), lambda b, p, qi_t, ki_t: (b, ki_t[p], 0)),
            ],
            out_specs=pl.BlockSpec((1, tq, C), lambda b, p, qi_t, ki_t: (b, qi_t[p], 0)),
            scratch_shapes=[
                pltpu.VMEM((n_head, tq, 1), jnp.float32),    # running max m
                pltpu.VMEM((n_head, tq, 1), jnp.float32),    # running sum l
                pltpu.VMEM((n_head, tq, hd), jnp.float32),   # per-head accumulator
            ],
        ),
        compiler_params=pltpu.CompilerParams(
            dimension_semantics=("parallel", "arbitrary"),
            vmem_limit_bytes=_VMEM_LIMIT,
        ),
    )(qi_tab, ki_tab, q, k, v)


# ----------------------------------------------------------------------------
# Parameter prep (one-time) + full forward pass
# ----------------------------------------------------------------------------
def prepare_params(w_qkv, b_qkv, w_proj, b_proj, *, n_head):
    """Split the fused (C, 3C) QKV weight into per-projection blocks and fold
    1/sqrt(head_dim) into the Q projection. One-time transform on weights."""
    C = w_qkv.shape[0]
    assert C % n_head == 0
    scale = 1.0 / math.sqrt(C // n_head)
    wq, wk, wv = w_qkv[:, :C] * scale, w_qkv[:, C:2 * C], w_qkv[:, 2 * C:]
    bq, bk, bv = b_qkv[:, :C] * scale, b_qkv[:, C:2 * C], b_qkv[:, 2 * C:]
    return (wq, bq, wk, bk, wv, bv, w_proj, b_proj)


def causal_self_attention(x, params, *, n_head):
    """x: (B, T, C); params from prepare_params. Dropout = 0.0."""
    wq, bq, wk, bk, wv, bv, w_proj, b_proj = params
    B, T, C = x.shape

    # c_attn: q, k, v produced directly as (B*T, C) each (no XLA split/transpose)
    q2d, k2d, v2d = _linear(x.reshape(B * T, C), ((wq, bq), (wk, bk), (wv, bv)))

    # flash attention on (B, T, C) layout, output already (B, T, C)
    y = _flash_attention(q2d.reshape(B, T, C), k2d.reshape(B, T, C),
                         v2d.reshape(B, T, C), n_head=n_head)

    # output projection
    (out,) = _linear(y.reshape(B * T, C), ((w_proj, b_proj),))
    return out.reshape(B, T, C)


# ----------------------------------------------------------------------------
# Pure-JAX reference mirroring the PyTorch forward (dropout = 0)
# ----------------------------------------------------------------------------
def _reference(x, w_qkv, b_qkv, w_proj, b_proj, n_head):
    B, T, C = x.shape
    hd = C // n_head
    qkv = x @ w_qkv + b_qkv[0]
    q, k, v = jnp.split(qkv, 3, axis=-1)
    q = q.reshape(B, T, n_head, hd).transpose(0, 2, 1, 3)
    k = k.reshape(B, T, n_head, hd).transpose(0, 2, 1, 3)
    v = v.reshape(B, T, n_head, hd).transpose(0, 2, 1, 3)
    att = jnp.einsum("bhqd,bhkd->bhqk", q, k) / math.sqrt(hd)
    mask = jnp.tril(jnp.ones((T, T), dtype=bool))
    att = jnp.where(mask[None, None], att, -jnp.inf)
    att = jax.nn.softmax(att, axis=-1)
    y = jnp.einsum("bhqk,bhkd->bhqd", att, v)
    y = y.transpose(0, 2, 1, 3).reshape(B, T, C)
    return y @ w_proj + b_proj[0]


if __name__ == "__main__":
    # Small config consistent with the module: n_embd=32, n_head=4, block_size>=T
    B, T, C = 2, 8, 32
    n_head = 4

    key = jax.random.PRNGKey(0)
    kx, k1, k2, k3, k4 = jax.random.split(key, 5)

    x = jax.random.normal(kx, (B, T, C), dtype=jnp.float32)

    # torch Linear semantics y = x @ W.T + b; weights stored pre-transposed (in, out)
    bound = 1.0 / math.sqrt(C)
    w_qkv = jax.random.uniform(k1, (C, 3 * C), jnp.float32, -bound, bound)
    b_qkv = jax.random.uniform(k2, (1, 3 * C), jnp.float32, -bound, bound)
    w_proj = jax.random.uniform(k3, (C, C), jnp.float32, -bound, bound)
    b_proj = jax.random.uniform(k4, (1, C), jnp.float32, -bound, bound)

    params = prepare_params(w_qkv, b_qkv, w_proj, b_proj, n_head=n_head)

    fn = jax.jit(functools.partial(causal_self_attention, n_head=n_head))
    out = jax.block_until_ready(fn(x, params))

    ref = _reference(x, w_qkv, b_qkv, w_proj, b_proj, n_head)
    assert out.shape == (B, T, C)
    assert jnp.allclose(out, ref, atol=2e-3, rtol=2e-3), "mismatch vs reference"

    print("KERNEL_OK")
</pallas_src>

<mosaic_0001>
module attributes {stable_mosaic.version = 11 : i64} {
  func.func @kernel(%arg0: i32, %arg1: i32, %arg2: memref<16x32xf32, #tpu.memory_space<vmem>>, %arg3: memref<32x32xf32, #tpu.memory_space<vmem>>, %arg4: memref<1x32xf32, #tpu.memory_space<vmem>>, %arg5: memref<32x32xf32, #tpu.memory_space<vmem>>, %arg6: memref<1x32xf32, #tpu.memory_space<vmem>>, %arg7: memref<32x32xf32, #tpu.memory_space<vmem>>, %arg8: memref<1x32xf32, #tpu.memory_space<vmem>>, %arg9: memref<16x32xf32, #tpu.memory_space<vmem>>, %arg10: memref<16x32xf32, #tpu.memory_space<vmem>>, %arg11: memref<16x32xf32, #tpu.memory_space<vmem>>) attributes {dimension_semantics = [#tpu.dimension_semantics<parallel>, #tpu.dimension_semantics<arbitrary>], iteration_bounds = array<i64: 1, 1>, scalar_prefetch = 0 : i64, scratch_operands = 0 : i64, tpu.core_type = #tpu.core_type<tc>, window_params = [{transform_indices = @transform_0, window_bounds = array<i64: 16, 32>}, {transform_indices = @transform_1, window_bounds = array<i64: 32, 32>}, {transform_indices = @transform_2, window_bounds = array<i64: 1, 32>}, {transform_indices = @transform_3, window_bounds = array<i64: 32, 32>}, {transform_indices = @transform_4, window_bounds = array<i64: 1, 32>}, {transform_indices = @transform_5, window_bounds = array<i64: 32, 32>}, {transform_indices = @transform_6, window_bounds = array<i64: 1, 32>}, {transform_indices = @transform_7, window_bounds = array<i64: 16, 32>}, {transform_indices = @transform_8, window_bounds = array<i64: 16, 32>}, {transform_indices = @transform_9, window_bounds = array<i64: 16, 32>}]} {
    %c0 = arith.constant 0 : index
    %c0_0 = arith.constant 0 : index
    %0 = vector.load %arg2[%c0, %c0_0] : memref<16x32xf32, #tpu.memory_space<vmem>>, vector<16x32xf32>
    %c0_1 = arith.constant 0 : index
    %c0_2 = arith.constant 0 : index
    %1 = vector.load %arg3[%c0_1, %c0_2] : memref<32x32xf32, #tpu.memory_space<vmem>>, vector<32x32xf32>
    %cst = arith.constant dense<0.000000e+00> : vector<16x32xf32>
    %2 = tpu.matmul %0, %1, %cst {dimension_numbers = #tpu.dot_dimension_numbers<[1], [0], [0], [1], [0, 0, 1, 1], [], []>} : vector<16x32xf32>, vector<32x32xf32>, vector<16x32xf32> -> vector<16x32xf32>
    %c0_3 = arith.constant 0 : index
    %c0_4 = arith.constant 0 : index
    %3 = vector.load %arg4[%c0_3, %c0_4] : memref<1x32xf32, #tpu.memory_space<vmem>>, vector<1x32xf32>
    %4 = vector.broadcast %3 : vector<1x32xf32> to vector<16x32xf32>
    %5 = arith.addf %2, %4 : vector<16x32xf32>
    %c0_5 = arith.constant 0 : index
    %c0_6 = arith.constant 0 : index
    %6 = vector.load %arg9[%c0_5, %c0_6] : memref<16x32xf32, #tpu.memory_space<vmem>>, vector<16x32xf32>
    tpu.vector_store %arg9[%c0_5, %c0_6], %5 {strides = array<i32>} : memref<16x32xf32, #tpu.memory_space<vmem>>, vector<16x32xf32>,
    %c0_7 = arith.constant 0 : index
    %c0_8 = arith.constant 0 : index
    %7 = vector.load %arg5[%c0_7, %c0_8] : memref<32x32xf32, #tpu.memory_space<vmem>>, vector<32x32xf32>
    %cst_9 = arith.constant dense<0.000000e+00> : vector<16x32xf32>
    %8 = tpu.matmul %0, %7, %cst_9 {dimension_numbers = #tpu.dot_dimension_numbers<[1], [0], [0], [1], [0, 0, 1, 1], [], []>} : vector<16x32xf32>, vector<32x32xf32>, vector<16x32xf32> -> vector<16x32xf32>
    %c0_10 = arith.constant 0 : index
    %c0_11 = arith.constant 0 : index
    %9 = vector.load %arg6[%c0_10, %c0_11] : memref<1x32xf32, #tpu.memory_space<vmem>>, vector<1x32xf32>
    %10 = vector.broadcast %9 : vector<1x32xf32> to vector<16x32xf32>
    %11 = arith.addf %8, %10 : vector<16x32xf32>
    %c0_12 = arith.constant 0 : index
    %c0_13 = arith.constant 0 : index
    %12 = vector.load %arg10[%c0_12, %c0_13] : memref<16x32xf32, #tpu.memory_space<vmem>>, vector<16x32xf32>
    tpu.vector_store %arg10[%c0_12, %c0_13], %11 {strides = array<i32>} : memref<16x32xf32, #tpu.memory_space<vmem>>, vector<16x32xf32>,
    %c0_14 = arith.constant 0 : index
    %c0_15 = arith.constant 0 : index
    %13 = vector.load %arg7[%c0_14, %c0_15] : memref<32x32xf32, #tpu.memory_space<vmem>>, vector<32x32xf32>
    %cst_16 = arith.constant dense<0.000000e+00> : vector<16x32xf32>
    %14 = tpu.matmul %0, %13, %cst_16 {dimension_numbers = #tpu.dot_dimension_numbers<[1], [0], [0], [1], [0, 0, 1, 1], [], []>} : vector<16x32xf32>, vector<32x32xf32>, vector<16x32xf32> -> vector<16x32xf32>
    %c0_17 = arith.constant 0 : index
    %c0_18 = arith.constant 0 : index
    %15 = vector.load %arg8[%c0_17, %c0_18] : memref<1x32xf32, #tpu.memory_space<vmem>>, vector<1x32xf32>
    %16 = vector.broadcast %15 : vector<1x32xf32> to vector<16x32xf32>
    %17 = arith.addf %14, %16 : vector<16x32xf32>
    %c0_19 = arith.constant 0 : index
    %c0_20 = arith.constant 0 : index
    %18 = vector.load %arg11[%c0_19, %c0_20] : memref<16x32xf32, #tpu.memory_space<vmem>>, vector<16x32xf32>
    tpu.vector_store %arg11[%c0_19, %c0_20], %17 {strides = array<i32>} : memref<16x32xf32, #tpu.memory_space<vmem>>, vector<16x32xf32>,
    return
  }
  func.func @transform_0(%arg0: i32, %arg1: i32) -> (i32, i32) {
    %c0_i32 = arith.constant 0 : i32
    %c0_i32_0 = arith.constant 0 : i32
    return %arg0, %c0_i32 : i32, i32
  }
  func.func @transform_1(%arg0: i32, %arg1: i32) -> (i32, i32) {
    %c0_i32 = arith.constant 0 : i32
    %c0_i32_0 = arith.constant 0 : i32
    return %c0_i32, %arg1 : i32, i32
  }
  func.func @transform_2(%arg0: i32, %arg1: i32) -> (i32, i32) {
    %c0_i32 = arith.constant 0 : i32
    %c0_i32_0 = arith.constant 0 : i32
    return %c0_i32, %arg1 : i32, i32
  }
  func.func @transform_3(%arg0: i32, %arg1: i32) -> (i32, i32) {
    %c0_i32 = arith.constant 0 : i32
    %c0_i32_0 = arith.constant 0 : i32
    return %c0_i32, %arg1 : i32, i32
  }
  func.func @transform_4(%arg0: i32, %arg1: i32) -> (i32, i32) {
    %c0_i32 = arith.constant 0 : i32
    %c0_i32_0 = arith.constant 0 : i32
    return %c0_i32, %arg1 : i32, i32
  }
  func.func @transform_5(%arg0: i32, %arg1: i32) -> (i32, i32) {
    %c0_i32 = arith.constant 0 : i32
    %c0_i32_0 = arith.constant 0 : i32
    return %c0_i32, %arg1 : i32, i32
  }
  func.func @transform_6(%arg0: i32, %arg1: i32) -> (i32, i32) {
    %c0_i32 = arith.constant 0 : i32
    %c0_i32_0 = arith.constant 0 : i32
    return %c0_i32, %arg1 : i32, i32
  }
  func.func @transform_7(%arg0: i32, %arg1: i32) -> (i32, i32) {
    %c0_i32 = arith.constant 0 : i32
    return %arg0, %arg1 : i32, i32
  }
  func.func @transform_8(%arg0: i32, %arg1: i32) -> (i32, i32) {
    %c0_i32 = arith.constant 0 : i32
    return %arg0, %arg1 : i32, i32
  }
  func.func @transform_9(%arg0: i32, %arg1: i32) -> (i32, i32) {
    %c0_i32 = arith.constant 0 : i32
    return %arg0, %arg1 : i32, i32
  }
}

module attributes {stable_mosaic.version = 11 : i64} {
  func.func @kernel(%arg0: i32, %arg1: i32, %arg2: memref<16x32xf32, #tpu.memory_space<vmem>>, %arg3: memref<32x32xf32, #tpu.memory_space<vmem>>, %arg4: memref<1x32xf32, #tpu.memory_space<vmem>>, %arg5: memref<16x32xf32, #tpu.memory_space<vmem>>) attributes {dimension_semantics = [#tpu.dimension_semantics<parallel>, #tpu.dimension_semantics<arbitrary>], iteration_bounds = array<i64: 1, 1>, scalar_prefetch = 0 : i64, scratch_operands = 0 : i64, tpu.core_type = #tpu.core_type<tc>, window_params = [{transform_indices = @transform_0, window_bounds = array<i64: 16, 32>}, {transform_indices = @transform_1, window_bounds = array<i64: 32, 32>}, {transform_indices = @transform_2, window_bounds = array<i64: 1, 32>}, {transform_indices = @transform_3, window_bounds = array<i64: 16, 32>}]} {
    %c0 = arith.constant 0 : index
    %c0_0 = arith.constant 0 : index
    %0 = vector.load %arg2[%c0, %c0_0] : memref<16x32xf32, #tpu.memory_space<vmem>>, vector<16x32xf32>
    %c0_1 = arith.constant 0 : index
    %c0_2 = arith.constant 0 : index
    %1 = vector.load %arg3[%c0_1, %c0_2] : memref<32x32xf32, #tpu.memory_space<vmem>>, vector<32x32xf32>
    %cst = arith.constant dense<0.000000e+00> : vector<16x32xf32>
    %2 = tpu.matmul %0, %1, %cst {dimension_numbers = #tpu.dot_dimension_numbers<[1], [0], [0], [1], [0, 0, 1, 1], [], []>} : vector<16x32xf32>, vector<32x32xf32>, vector<16x32xf32> -> vector<16x32xf32>
    %c0_3 = arith.constant 0 : index
    %c0_4 = arith.constant 0 : index
    %3 = vector.load %arg4[%c0_3, %c0_4] : memref<1x32xf32, #tpu.memory_space<vmem>>, vector<1x32xf32>
    %4 = vector.broadcast %3 : vector<1x32xf32> to vector<16x32xf32>
    %5 = arith.addf %2, %4 : vector<16x32xf32>
    %c0_5 = arith.constant 0 : index
    %c0_6 = arith.constant 0 : index
    %6 = vector.load %arg5[%c0_5, %c0_6] : memref<16x32xf32, #tpu.memory_space<vmem>>, vector<16x32xf32>
    tpu.vector_store %arg5[%c0_5, %c0_6], %5 {strides = array<i32>} : memref<16x32xf32, #tpu.memory_space<vmem>>, vector<16x32xf32>,
    return
  }
  func.func @transform_0(%arg0: i32, %arg1: i32) -> (i32, i32) {
    %c0_i32 = arith.constant 0 : i32
    %c0_i32_0 = arith.constant 0 : i32
    return %arg0, %c0_i32 : i32, i32
  }
  func.func @transform_1(%arg0: i32, %arg1: i32) -> (i32, i32) {
    %c0_i32 = arith.constant 0 : i32
    %c0_i32_0 = arith.constant 0 : i32
    return %c0_i32, %arg1 : i32, i32
  }
  func.func @transform_2(%arg0: i32, %arg1: i32) -> (i32, i32) {
    %c0_i32 = arith.constant 0 : i32
    %c0_i32_0 = arith.constant 0 : i32
    return %c0_i32, %arg1 : i32, i32
  }
  func.func @transform_3(%arg0: i32, %arg1: i32) -> (i32, i32) {
    %c0_i32 = arith.constant 0 : i32
    return %arg0, %arg1 : i32, i32
  }
}

module attributes {stable_mosaic.version = 11 : i64} {
  func.func @_flash_attn_kernel(%arg0: i32, %arg1: i32, %arg2: memref<1xi32, #tpu.memory_space<smem>>, %arg3: memref<1xi32, #tpu.memory_space<smem>>, %arg4: memref<1x8x32xf32, #tpu.memory_space<vmem>>, %arg5: memref<1x8x32xf32, #tpu.memory_space<vmem>>, %arg6: memref<1x8x32xf32, #tpu.memory_space<vmem>>, %arg7: memref<1x8x32xf32, #tpu.memory_space<vmem>>, %arg8: memref<4x8x1xf32, #tpu.memory_space<vmem>>, %arg9: memref<4x8x1xf32, #tpu.memory_space<vmem>>, %arg10: memref<4x8x8xf32, #tpu.memory_space<vmem>>) attributes {dimension_semantics = [#tpu.dimension_semantics<parallel>, #tpu.dimension_semantics<arbitrary>], iteration_bounds = array<i64: 2, 1>, scalar_prefetch = 2 : i64, scratch_operands = 3 : i64, tpu.core_type = #tpu.core_type<tc>, window_params = [{transform_indices = @transform_0, window_bounds = array<i64: 1, 8, 32>}, {transform_indices = @transform_1, window_bounds = array<i64: 1, 8, 32>}, {transform_indices = @transform_2, window_bounds = array<i64: 1, 8, 32>}, {transform_indices = @transform_3, window_bounds = array<i64: 1, 8, 32>}]} {
    %0 = arith.index_cast %arg1 : i32 to index
    %1 = memref.load %arg2[%0] : memref<1xi32, #tpu.memory_space<smem>>
    %2 = arith.index_cast %arg1 : i32 to index
    %3 = memref.load %arg3[%2] : memref<1xi32, #tpu.memory_space<smem>>
    %c0_i32 = arith.constant 0 : i32
    %4 = arith.cmpi eq, %3, %c0_i32 : i32
    %5 = arith.extui %4 : i1 to i32
    %c0_i32_0 = arith.constant 0 : i32
    %6 = arith.cmpi ne, %5, %c0_i32_0 : i32
    scf.if %6 {
      %cst_99 = arith.constant 0xFF800000 : f32
      %173 = vector.broadcast %cst_99 : f32 to vector<4x8x1xf32>
      %c0_100 = arith.constant 0 : index
      %c0_101 = arith.constant 0 : index
      %c0_102 = arith.constant 0 : index
      %174 = vector.load %arg8[%c0_100, %c0_101, %c0_102] : memref<4x8x1xf32, #tpu.memory_space<vmem>>, vector<4x8x1xf32>
      tpu.vector_store %arg8[%c0_100, %c0_101, %c0_102], %173 {strides = array<i32>} : memref<4x8x1xf32, #tpu.memory_space<vmem>>, vector<4x8x1xf32>,
      %cst_103 = arith.constant 0.000000e+00 : f32
      %175 = vector.broadcast %cst_103 : f32 to vector<4x8x1xf32>
      %c0_104 = arith.constant 0 : index
      %c0_105 = arith.constant 0 : index
      %c0_106 = arith.constant 0 : index
      %176 = vector.load %arg9[%c0_104, %c0_105, %c0_106] : memref<4x8x1xf32, #tpu.memory_space<vmem>>, vector<4x8x1xf32>
      tpu.vector_store %arg9[%c0_104, %c0_105, %c0_106], %175 {strides = array<i32>} : memref<4x8x1xf32, #tpu.memory_space<vmem>>, vector<4x8x1xf32>,
      %cst_107 = arith.constant 0.000000e+00 : f32
      %177 = vector.broadcast %cst_107 : f32 to vector<4x8x8xf32>
      %c0_108 = arith.constant 0 : index
      %c0_109 = arith.constant 0 : index
      %c0_110 = arith.constant 0 : index
      %178 = vector.load %arg10[%c0_108, %c0_109, %c0_110] : memref<4x8x8xf32, #tpu.memory_space<vmem>>, vector<4x8x8xf32>
      tpu.vector_store %arg10[%c0_108, %c0_109, %c0_110], %177 {strides = array<i32>} : memref<4x8x8xf32, #tpu.memory_space<vmem>>, vector<4x8x8xf32>,
    } else {
    }
    %7 = tpu.iota {dimensions = array<i32: 0>} : vector<8x8xi32>
    %c8_i32 = arith.constant 8 : i32
    %8 = arith.muli %1, %c8_i32 : i32
    %9 = vector.broadcast %8 : i32 to vector<8x8xi32>
    %10 = arith.addi %7, %9 : vector<8x8xi32>
    %11 = tpu.iota {dimensions = array<i32: 1>} : vector<8x8xi32>
    %c8_i32_1 = arith.constant 8 : i32
    %12 = arith.muli %3, %c8_i32_1 : i32
    %13 = vector.broadcast %12 : i32 to vector<8x8xi32>
    %14 = arith.addi %11, %13 : vector<8x8xi32>
    %15 = arith.cmpi sge, %10, %14 : vector<8x8xi32>
    %c0 = arith.constant 0 : index
    %c0_2 = arith.constant 0 : index
    %c0_3 = arith.constant 0 : index
    %16 = vector.load %arg4[%c0, %c0_2, %c0_3] : memref<1x8x32xf32, #tpu.memory_space<vmem>>, vector<1x8x32xf32>
    %17 = vector.shape_cast %16 : vector<1x8x32xf32> to vector<8x32xf32>
    %c0_4 = arith.constant 0 : index
    %c0_5 = arith.constant 0 : index
    %c0_6 = arith.constant 0 : index
    %18 = vector.load %arg5[%c0_4, %c0_5, %c0_6] : memref<1x8x32xf32, #tpu.memory_space<vmem>>, vector<1x8x32xf32>
    %19 = vector.shape_cast %18 : vector<1x8x32xf32> to vector<8x32xf32>
    %c0_7 = arith.constant 0 : index
    %c0_8 = arith.constant 0 : index
    %c0_9 = arith.constant 0 : index
    %20 = vector.load %arg6[%c0_7, %c0_8, %c0_9] : memref<1x8x32xf32, #tpu.memory_space<vmem>>, vector<1x8x32xf32>
    %21 = vector.shape_cast %20 : vector<1x8x32xf32> to vector<8x32xf32>
    %22 = vector.extract_strided_slice %17 {offsets = [0, 0], sizes = [8, 8], strides = [1, 1]} : vector<8x32xf32> to vector<8x8xf32>
    %23 = vector.extract_strided_slice %19 {offsets = [0, 0], sizes = [8, 8], strides = [1, 1]} : vector<8x32xf32> to vector<8x8xf32>
    %24 = vector.extract_strided_slice %21 {offsets = [0, 0], sizes = [8, 8], strides = [1, 1]} : vector<8x32xf32> to vector<8x8xf32>
    %cst = arith.constant dense<0.000000e+00> : vector<8x8xf32>
    %25 = tpu.matmul %22, %23, %cst {dimension_numbers = #tpu.dot_dimension_numbers<[1], [1], [0], [0], [0, 0, 1, 0], [], []>} : vector<8x8xf32>, vector<8x8xf32>, vector<8x8xf32> -> vector<8x8xf32>
    %cst_10 = arith.constant -1.000000e+30 : f32
    %26 = vector.broadcast %cst_10 : f32 to vector<8x8xf32>
    %27 = arith.select %15, %25, %26 : vector<8x8xi1>, vector<8x8xf32>
    %c0_11 = arith.constant 0 : index
    %c0_12 = arith.constant 0 : index
    %c0_13 = arith.constant 0 : index
    %28 = vector.load %arg8[%c0_11, %c0_12, %c0_13] : memref<4x8x1xf32, #tpu.memory_space<vmem>>, vector<1x8x1xf32>
    %29 = vector.shape_cast %28 : vector<1x8x1xf32> to vector<8x1xf32>
    %cst_14 = arith.constant dense<0xFF800000> : vector<8xf32>
    %30 = vector.multi_reduction <maximumf>, %27, %cst_14 [1] : vector<8x8xf32> to vector<8xf32>
    %31 = vector.shape_cast %30 : vector<8xf32> to vector<8x1xf32>
    %32 = arith.maximumf %29, %31 : vector<8x1xf32>
    %33 = arith.subf %29, %32 : vector<8x1xf32>
    %34 = math.exp %33 : vector<8x1xf32>
    %35 = vector.broadcast %32 : vector<8x1xf32> to vector<8x8xf32>
    %36 = arith.subf %27, %35 : vector<8x8xf32>
    %37 = math.exp %36 : vector<8x8xf32>
    %c0_15 = arith.constant 0 : index
    %c0_16 = arith.constant 0 : index
    %c0_17 = arith.constant 0 : index
    %38 = vector.load %arg9[%c0_15, %c0_16, %c0_17] : memref<4x8x1xf32, #tpu.memory_space<vmem>>, vector<1x8x1xf32>
    %39 = vector.shape_cast %38 : vector<1x8x1xf32> to vector<8x1xf32>
    %40 = arith.mulf %34, %39 : vector<8x1xf32>
    %cst_18 = arith.constant dense<0.000000e+00> : vector<8xf32>
    %41 = vector.multi_reduction <add>, %37, %cst_18 [1] : vector<8x8xf32> to vector<8xf32>
    %42 = vector.shape_cast %41 : vector<8xf32> to vector<8x1xf32>
    %43 = arith.addf %40, %42 : vector<8x1xf32>
    %c0_19 = arith.constant 0 : index
    %c0_20 = arith.constant 0 : index
    %c0_21 = arith.constant 0 : index
    %44 = vector.load %arg9[%c0_19, %c0_20, %c0_21] : memref<4x8x1xf32, #tpu.memory_space<vmem>>, vector<1x8x1xf32>
    %45 = vector.shape_cast %44 : vector<1x8x1xf32> to vector<8x1xf32>
    %46 = vector.shape_cast %43 : vector<8x1xf32> to vector<1x8x1xf32>
    tpu.vector_store %arg9[%c0_19, %c0_20, %c0_21], %46 {strides = array<i32>} : memref<4x8x1xf32, #tpu.memory_space<vmem>>, vector<1x8x1xf32>,
    %c0_22 = arith.constant 0 : index
    %c0_23 = arith.constant 0 : index
    %c0_24 = arith.constant 0 : index
    %47 = vector.load %arg10[%c0_22, %c0_23, %c0_24] : memref<4x8x8xf32, #tpu.memory_space<vmem>>, vector<1x8x8xf32>
    %48 = vector.shape_cast %47 : vector<1x8x8xf32> to vector<8x8xf32>
    %49 = vector.broadcast %34 : vector<8x1xf32> to vector<8x8xf32>
    %50 = arith.mulf %49, %48 : vector<8x8xf32>
    %cst_25 = arith.constant dense<0.000000e+00> : vector<8x8xf32>
    %51 = tpu.matmul %37, %24, %cst_25 {dimension_numbers = #tpu.dot_dimension_numbers<[1], [0], [0], [1], [0, 0, 1, 1], [], []>} : vector<8x8xf32>, vector<8x8xf32>, vector<8x8xf32> -> vector<8x8xf32>
    %52 = arith.addf %50, %51 : vector<8x8xf32>
    %c0_26 = arith.constant 0 : index
    %c0_27 = arith.constant 0 : index
    %c0_28 = arith.constant 0 : index
    %53 = vector.load %arg10[%c0_26, %c0_27, %c0_28] : memref<4x8x8xf32, #tpu.memory_space<vmem>>, vector<1x8x8xf32>
    %54 = vector.shape_cast %53 : vector<1x8x8xf32> to vector<8x8xf32>
    %55 = vector.shape_cast %52 : vector<8x8xf32> to vector<1x8x8xf32>
    tpu.vector_store %arg10[%c0_26, %c0_27, %c0_28], %55 {strides = array<i32>} : memref<4x8x8xf32, #tpu.memory_space<vmem>>, vector<1x8x8xf32>,
    %c0_29 = arith.constant 0 : index
    %c0_30 = arith.constant 0 : index
    %c0_31 = arith.constant 0 : index
    %56 = vector.load %arg8[%c0_29, %c0_30, %c0_31] : memref<4x8x1xf32, #tpu.memory_space<vmem>>, vector<1x8x1xf32>
    %57 = vector.shape_cast %56 : vector<1x8x1xf32> to vector<8x1xf32>
    %58 = vector.shape_cast %32 : vector<8x1xf32> to vector<1x8x1xf32>
    tpu.vector_store %arg8[%c0_29, %c0_30, %c0_31], %58 {strides = array<i32>} : memref<4x8x1xf32, #tpu.memory_space<vmem>>, vector<1x8x1xf32>,
    %59 = vector.extract_strided_slice %17 {offsets = [0, 8], sizes = [8, 8], strides = [1, 1]} : vector<8x32xf32> to vector<8x8xf32>
    %60 = vector.extract_strided_slice %19 {offsets = [0, 8], sizes = [8, 8], strides = [1, 1]} : vector<8x32xf32> to vector<8x8xf32>
    %61 = vector.extract_strided_slice %21 {offsets = [0, 8], sizes = [8, 8], strides = [1, 1]} : vector<8x32xf32> to vector<8x8xf32>
    %cst_32 = arith.constant dense<0.000000e+00> : vector<8x8xf32>
    %62 = tpu.matmul %59, %60, %cst_32 {dimension_numbers = #tpu.dot_dimension_numbers<[1], [1], [0], [0], [0, 0, 1, 0], [], []>} : vector<8x8xf32>, vector<8x8xf32>, vector<8x8xf32> -> vector<8x8xf32>
    %cst_33 = arith.constant -1.000000e+30 : f32
    %63 = vector.broadcast %cst_33 : f32 to vector<8x8xf32>
    %64 = arith.select %15, %62, %63 : vector<8x8xi1>, vector<8x8xf32>
    %c1 = arith.constant 1 : index
    %c0_34 = arith.constant 0 : index
    %c0_35 = arith.constant 0 : index
    %65 = vector.load %arg8[%c1, %c0_34, %c0_35] : memref<4x8x1xf32, #tpu.memory_space<vmem>>, vector<1x8x1xf32>
    %66 = vector.shape_cast %65 : vector<1x8x1xf32> to vector<8x1xf32>
    %cst_36 = arith.constant dense<0xFF800000> : vector<8xf32>
    %67 = vector.multi_reduction <maximumf>, %64, %cst_36 [1] : vector<8x8xf32> to vector<8xf32>
    %68 = vector.shape_cast %67 : vector<8xf32> to vector<8x1xf32>
    %69 = arith.maximumf %66, %68 : vector<8x1xf32>
    %70 = arith.subf %66, %69 : vector<8x1xf32>
    %71 = math.exp %70 : vector<8x1xf32>
    %72 = vector.broadcast %69 : vector<8x1xf32> to vector<8x8xf32>
    %73 = arith.subf %64, %72 : vector<8x8xf32>
    %74 = math.exp %73 : vector<8x8xf32>
    %c1_37 = arith.constant 1 : index
    %c0_38 = arith.constant 0 : index
    %c0_39 = arith.constant 0 : index
    %75 = vector.load %arg9[%c1_37, %c0_38, %c0_39] : memref<4x8x1xf32, #tpu.memory_space<vmem>>, vector<1x8x1xf32>
    %76 = vector.shape_cast %75 : vector<1x8x1xf32> to vector<8x1xf32>
    %77 = arith.mulf %71, %76 : vector<8x1xf32>
    %cst_40 = arith.constant dense<0.000000e+00> : vector<8xf32>
    %78 = vector.multi_reduction <add>, %74, %cst_40 [1] : vector<8x8xf32> to vector<8xf32>
    %79 = vector.shape_cast %78 : vector<8xf32> to vector<8x1xf32>
    %80 = arith.addf %77, %79 : vector<8x1xf32>
    %c1_41 = arith.constant 1 : index
    %c0_42 = arith.constant 0 : index
    %c0_43 = arith.constant 0 : index
    %81 = vector.load %arg9[%c1_41, %c0_42, %c0_43] : memref<4x8x1xf32, #tpu.memory_space<vmem>>, vector<1x8x1xf32>
    %82 = vector.shape_cast %81 : vector<1x8x1xf32> to vector<8x1xf32>
    %83 = vector.shape_cast %80 : vector<8x1xf32> to vector<1x8x1xf32>
    tpu.vector_store %arg9[%c1_41, %c0_42, %c0_43], %83 {strides = array<i32>} : memref<4x8x1xf32, #tpu.memory_space<vmem>>, vector<1x8x1xf32>,
    %c1_44 = arith.constant 1 : index
    %c0_45 = arith.constant 0 : index
    %c0_46 = arith.constant 0 : index
    %84 = vector.load %arg10[%c1_44, %c0_45, %c0_46] : memref<4x8x8xf32, #tpu.memory_space<vmem>>, vector<1x8x8xf32>
    %85 = vector.shape_cast %84 : vector<1x8x8xf32> to vector<8x8xf32>
    %86 = vector.broadcast %71 : vector<8x1xf32> to vector<8x8xf32>
    %87 = arith.mulf %86, %85 : vector<8x8xf32>
    %cst_47 = arith.constant dense<0.000000e+00> : vector<8x8xf32>
    %88 = tpu.matmul %74, %61, %cst_47 {dimension_numbers = #tpu.dot_dimension_numbers<[1], [0], [0], [1], [0, 0, 1, 1], [], []>} : vector<8x8xf32>, vector<8x8xf32>, vector<8x8xf32> -> vector<8x8xf32>
    %89 = arith.addf %87, %88 : vector<8x8xf32>
    %c1_48 = arith.constant 1 : index
    %c0_49 = arith.constant 0 : index
    %c0_50 = arith.constant 0 : index
    %90 = vector.load %arg10[%c1_48, %c0_49, %c0_50] : memref<4x8x8xf32, #tpu.memory_space<vmem>>, vector<1x8x8xf32>
    %91 = vector.shape_cast %90 : vector<1x8x8xf32> to vector<8x8xf32>
    %92 = vector.shape_cast %89 : vector<8x8xf32> to vector<1x8x8xf32>
    tpu.vector_store %arg10[%c1_48, %c0_49, %c0_50], %92 {strides = array<i32>} : memref<4x8x8xf32, #tpu.memory_space<vmem>>, vector<1x8x8xf32>,
    %c1_51 = arith.constant 1 : index
    %c0_52 = arith.constant 0 : index
    %c0_53 = arith.constant 0 : index
    %93 = vector.load %arg8[%c1_51, %c0_52, %c0_53] : memref<4x8x1xf32, #tpu.memory_space<vmem>>, vector<1x8x1xf32>
    %94 = vector.shape_cast %93 : vector<1x8x1xf32> to vector<8x1xf32>
    %95 = vector.shape_cast %69 : vector<8x1xf32> to vector<1x8x1xf32>
    tpu.vector_store %arg8[%c1_51, %c0_52, %c0_53], %95 {strides = array<i32>} : memref<4x8x1xf32, #tpu.memory_space<vmem>>, vector<1x8x1xf32>,
    %96 = vector.extract_strided_slice %17 {offsets = [0, 16], sizes = [8, 8], strides = [1, 1]} : vector<8x32xf32> to vector<8x8xf32>
    %97 = vector.extract_strided_slice %19 {offsets = [0, 16], sizes = [8, 8], strides = [1, 1]} : vector<8x32xf32> to vector<8x8xf32>
    %98 = vector.extract_strided_slice %21 {offsets = [0, 16], sizes = [8, 8], strides = [1, 1]} : vector<8x32xf32> to vector<8x8xf32>
    %cst_54 = arith.constant dense<0.000000e+00> : vector<8x8xf32>
    %99 = tpu.matmul %96, %97, %cst_54 {dimension_numbers = #tpu.dot_dimension_numbers<[1], [1], [0], [0], [0, 0, 1, 0], [], []>} : vector<8x8xf32>, vector<8x8xf32>, vector<8x8xf32> -> vector<8x8xf32>
    %cst_55 = arith.constant -1.000000e+30 : f32
    %100 = vector.broadcast %cst_55 : f32 to vector<8x8xf32>
    %101 = arith.select %15, %99, %100 : vector<8x8xi1>, vector<8x8xf32>
    %c2 = arith.constant 2 : index
    %c0_56 = arith.constant 0 : index
    %c0_57 = arith.constant 0 : index
    %102 = vector.load %arg8[%c2, %c0_56, %c0_57] : memref<4x8x1xf32, #tpu.memory_space<vmem>>, vector<1x8x1xf32>
    %103 = vector.shape_cast %102 : vector<1x8x1xf32> to vector<8x1xf32>
    %cst_58 = arith.constant dense<0xFF800000> : vector<8xf32>
    %104 = vector.multi_reduction <maximumf>, %101, %cst_58 [1] : vector<8x8xf32> to vector<8xf32>
    %105 = vector.shape_cast %104 : vector<8xf32> to vector<8x1xf32>
    %106 = arith.maximumf %103, %105 : vector<8x1xf32>
    %107 = arith.subf %103, %106 : vector<8x1xf32>
    %108 = math.exp %107 : vector<8x1xf32>
    %109 = vector.broadcast %106 : vector<8x1xf32> to vector<8x8xf32>
    %110 = arith.subf %101, %109 : vector<8x8xf32>
    %111 = math.exp %110 : vector<8x8xf32>
    %c2_59 = arith.constant 2 : index
    %c0_60 = arith.constant 0 : index
    %c0_61 = arith.constant 0 : index
    %112 = vector.load %arg9[%c2_59, %c0_60, %c0_61] : memref<4x8x1xf32, #tpu.memory_space<vmem>>, vector<1x8x1xf32>
    %113 = vector.shape_cast %112 : vector<1x8x1xf32> to vector<8x1xf32>
    %114 = arith.mulf %108, %113 : vector<8x1xf32>
    %cst_62 = arith.constant dense<0.000000e+00> : vector<8xf32>
    %115 = vector.multi_reduction <add>, %111, %cst_62 [1] : vector<8x8xf32> to vector<8xf32>
    %116 = vector.shape_cast %115 : vector<8xf32> to vector<8x1xf32>
    %117 = arith.addf %114, %116 : vector<8x1xf32>
    %c2_63 = arith.constant 2 : index
    %c0_64 = arith.constant 0 : index
    %c0_65 = arith.constant 0 : index
    %118 = vector.load %arg9[%c2_63, %c0_64, %c0_65] : memref<4x8x1xf32, #tpu.memory_space<vmem>>, vector<1x8x1xf32>
    %119 = vector.shape_cast %118 : vector<1x8x1xf32> to vector<8x1xf32>
    %120 = vector.shape_cast %117 : vector<8x1xf32> to vector<1x8x1xf32>
    tpu.vector_store %arg9[%c2_63, %c0_64, %c0_65], %120 {strides = array<i32>} : memref<4x8x1xf32, #tpu.memory_space<vmem>>, vector<1x8x1xf32>,
    %c2_66 = arith.constant 2 : index
    %c0_67 = arith.constant 0 : index
    %c0_68 = arith.constant 0 : index
    %121 = vector.load %arg10[%c2_66, %c0_67, %c0_68] : memref<4x8x8xf32, #tpu.memory_space<vmem>>, vector<1x8x8xf32>
    %122 = vector.shape_cast %121 : vector<1x8x8xf32> to vector<8x8xf32>
    %123 = vector.broadcast %108 : vector<8x1xf32> to vector<8x8xf32>
    %124 = arith.mulf %123, %122 : vector<8x8xf32>
    %cst_69 = arith.constant dense<0.000000e+00> : vector<8x8xf32>
    %125 = tpu.matmul %111, %98, %cst_69 {dimension_numbers = #tpu.dot_dimension_numbers<[1], [0], [0], [1], [0, 0, 1, 1], [], []>} : vector<8x8xf32>, vector<8x8xf32>, vector<8x8xf32> -> vector<8x8xf32>
    %126 = arith.addf %124, %125 : vector<8x8xf32>
    %c2_70 = arith.constant 2 : index
    %c0_71 = arith.constant 0 : index
    %c0_72 = arith.constant 0 : index
    %127 = vector.load %arg10[%c2_70, %c0_71, %c0_72] : memref<4x8x8xf32, #tpu.memory_space<vmem>>, vector<1x8x8xf32>
    %128 = vector.shape_cast %127 : vector<1x8x8xf32> to vector<8x8xf32>
    %129 = vector.shape_cast %126 : vector<8x8xf32> to vector<1x8x8xf32>
    tpu.vector_store %arg10[%c2_70, %c0_71, %c0_72], %129 {strides = array<i32>} : memref<4x8x8xf32, #tpu.memory_space<vmem>>, vector<1x8x8xf32>,
    %c2_73 = arith.constant 2 : index
    %c0_74 = arith.constant 0 : index
    %c0_75 = arith.constant 0 : index
    %130 = vector.load %arg8[%c2_73, %c0_74, %c0_75] : memref<4x8x1xf32, #tpu.memory_space<vmem>>, vector<1x8x1xf32>
    %131 = vector.shape_cast %130 : vector<1x8x1xf32> to vector<8x1xf32>
    %132 = vector.shape_cast %106 : vector<8x1xf32> to vector<1x8x1xf32>
    tpu.vector_store %arg8[%c2_73, %c0_74, %c0_75], %132 {strides = array<i32>} : memref<4x8x1xf32, #tpu.memory_space<vmem>>, vector<1x8x1xf32>,
    %133 = vector.extract_strided_slice %17 {offsets = [0, 24], sizes = [8, 8], strides = [1, 1]} : vector<8x32xf32> to vector<8x8xf32>
    %134 = vector.extract_strided_slice %19 {offsets = [0, 24], sizes = [8, 8], strides = [1, 1]} : vector<8x32xf32> to vector<8x8xf32>
    %135 = vector.extract_strided_slice %21 {offsets = [0, 24], sizes = [8, 8], strides = [1, 1]} : vector<8x32xf32> to vector<8x8xf32>
    %cst_76 = arith.constant dense<0.000000e+00> : vector<8x8xf32>
    %136 = tpu.matmul %133, %134, %cst_76 {dimension_numbers = #tpu.dot_dimension_numbers<[1], [1], [0], [0], [0, 0, 1, 0], [], []>} : vector<8x8xf32>, vector<8x8xf32>, vector<8x8xf32> -> vector<8x8xf32>
    %cst_77 = arith.constant -1.000000e+30 : f32
    %137 = vector.broadcast %cst_77 : f32 to vector<8x8xf32>
    %138 = arith.select %15, %136, %137 : vector<8x8xi1>, vector<8x8xf32>
    %c3 = arith.constant 3 : index
    %c0_78 = arith.constant 0 : index
    %c0_79 = arith.constant 0 : index
    %139 = vector.load %arg8[%c3, %c0_78, %c0_79] : memref<4x8x1xf32, #tpu.memory_space<vmem>>, vector<1x8x1xf32>
    %140 = vector.shape_cast %139 : vector<1x8x1xf32> to vector<8x1xf32>
    %cst_80 = arith.constant dense<0xFF800000> : vector<8xf32>
    %141 = vector.multi_reduction <maximumf>, %138, %cst_80 [1] : vector<8x8xf32> to vector<8xf32>
    %142 = vector.shape_cast %141 : vector<8xf32> to vector<8x1xf32>
    %143 = arith.maximumf %140, %142 : vector<8x1xf32>
    %144 = arith.subf %140, %143 : vector<8x1xf32>
    %145 = math.exp %144 : vector<8x1xf32>
    %146 = vector.broadcast %143 : vector<8x1xf32> to vector<8x8xf32>
    %147 = arith.subf %138, %146 : vector<8x8xf32>
    %148 = math.exp %147 : vector<8x8xf32>
    %c3_81 = arith.constant 3 : index
    %c0_82 = arith.constant 0 : index
    %c0_83 = arith.constant 0 : index
    %149 = vector.load %arg9[%c3_81, %c0_82, %c0_83] : memref<4x8x1xf32, #tpu.memory_space<vmem>>, vector<1x8x1xf32>
    %150 = vector.shape_cast %149 : vector<1x8x1xf32> to vector<8x1xf32>
    %151 = arith.mulf %145, %150 : vector<8x1xf32>
    %cst_84 = arith.constant dense<0.000000e+00> : vector<8xf32>
    %152 = vector.multi_reduction <add>, %148, %cst_84 [1] : vector<8x8xf32> to vector<8xf32>
    %153 = vector.shape_cast %152 : vector<8xf32> to vector<8x1xf32>
    %154 = arith.addf %151, %153 : vector<8x1xf32>
    %c3_85 = arith.constant 3 : index
    %c0_86 = arith.constant 0 : index
    %c0_87 = arith.constant 0 : index
    %155 = vector.load %arg9[%c3_85, %c0_86, %c0_87] : memref<4x8x1xf32, #tpu.memory_space<vmem>>, vector<1x8x1xf32>
    %156 = vector.shape_cast %155 : vector<1x8x1xf32> to vector<8x1xf32>
    %157 = vector.shape_cast %154 : vector<8x1xf32> to vector<1x8x1xf32>
    tpu.vector_store %arg9[%c3_85, %c0_86, %c0_87], %157 {strides = array<i32>} : memref<4x8x1xf32, #tpu.memory_space<vmem>>, vector<1x8x1xf32>,
    %c3_88 = arith.constant 3 : index
    %c0_89 = arith.constant 0 : index
    %c0_90 = arith.constant 0 : index
    %158 = vector.load %arg10[%c3_88, %c0_89, %c0_90] : memref<4x8x8xf32, #tpu.memory_space<vmem>>, vector<1x8x8xf32>
    %159 = vector.shape_cast %158 : vector<1x8x8xf32> to vector<8x8xf32>
    %160 = vector.broadcast %145 : vector<8x1xf32> to vector<8x8xf32>
    %161 = arith.mulf %160, %159 : vector<8x8xf32>
    %cst_91 = arith.constant dense<0.000000e+00> : vector<8x8xf32>
    %162 = tpu.matmul %148, %135, %cst_91 {dimension_numbers = #tpu.dot_dimension_numbers<[1], [0], [0], [1], [0, 0, 1, 1], [], []>} : vector<8x8xf32>, vector<8x8xf32>, vector<8x8xf32> -> vector<8x8xf32>
    %163 = arith.addf %161, %162 : vector<8x8xf32>
    %c3_92 = arith.constant 3 : index
    %c0_93 = arith.constant 0 : index
    %c0_94 = arith.constant 0 : index
    %164 = vector.load %arg10[%c3_92, %c0_93, %c0_94] : memref<4x8x8xf32, #tpu.memory_space<vmem>>, vector<1x8x8xf32>
    %165 = vector.shape_cast %164 : vector<1x8x8xf32> to vector<8x8xf32>
    %166 = vector.shape_cast %163 : vector<8x8xf32> to vector<1x8x8xf32>
    tpu.vector_store %arg10[%c3_92, %c0_93, %c0_94], %166 {strides = array<i32>} : memref<4x8x8xf32, #tpu.memory_space<vmem>>, vector<1x8x8xf32>,
    %c3_95 = arith.constant 3 : index
    %c0_96 = arith.constant 0 : index
    %c0_97 = arith.constant 0 : index
    %167 = vector.load %arg8[%c3_95, %c0_96, %c0_97] : memref<4x8x1xf32, #tpu.memory_space<vmem>>, vector<1x8x1xf32>
    %168 = vector.shape_cast %167 : vector<1x8x1xf32> to vector<8x1xf32>
    %169 = vector.shape_cast %143 : vector<8x1xf32> to vector<1x8x1xf32>
    tpu.vector_store %arg8[%c3_95, %c0_96, %c0_97], %169 {strides = array<i32>} : memref<4x8x1xf32, #tpu.memory_space<vmem>>, vector<1x8x1xf32>,
    %170 = arith.cmpi eq, %3, %1 : i32
    %171 = arith.extui %170 : i1 to i32
    %c0_i32_98 = arith.constant 0 : i32
    %172 = arith.cmpi ne, %171, %c0_i32_98 : i32
    scf.if %172 {
      %c0_99 = arith.constant 0 : index
      %c0_100 = arith.constant 0 : index
      %c0_101 = arith.constant 0 : index
      %173 = vector.load %arg9[%c0_99, %c0_100, %c0_101] : memref<4x8x1xf32, #tpu.memory_space<vmem>>, vector<1x8x1xf32>
      %174 = vector.shape_cast %173 : vector<1x8x1xf32> to vector<8x1xf32>
      %175 = tpu.reciprocal %174 : vector<8x1xf32> -> vector<8x1xf32>
      %c0_102 = arith.constant 0 : index
      %c0_103 = arith.constant 0 : index
      %c0_104 = arith.constant 0 : index
      %176 = vector.load %arg10[%c0_102, %c0_103, %c0_104] : memref<4x8x8xf32, #tpu.memory_space<vmem>>, vector<1x8x8xf32>
      %177 = vector.shape_cast %176 : vector<1x8x8xf32> to vector<8x8xf32>
      %178 = vector.broadcast %175 : vector<8x1xf32> to vector<8x8xf32>
      %179 = arith.mulf %177, %178 : vector<8x8xf32>
      %c0_105 = arith.constant 0 : index
      %c0_106 = arith.constant 0 : index
      %c0_107 = arith.constant 0 : index
      %180 = vector.load %arg7[%c0_105, %c0_106, %c0_107] : memref<1x8x32xf32, #tpu.memory_space<vmem>>, vector<1x8x8xf32>
      %181 = vector.shape_cast %180 : vector<1x8x8xf32> to vector<8x8xf32>
      %182 = vector.shape_cast %179 : vector<8x8xf32> to vector<1x8x8xf32>
      tpu.vector_store %arg7[%c0_105, %c0_106, %c0_107], %182 {strides = array<i32>} : memref<1x8x32xf32, #tpu.memory_space<vmem>>, vector<1x8x8xf32>,
      %c1_108 = arith.constant 1 : index
      %c0_109 = arith.constant 0 : index
      %c0_110 = arith.constant 0 : index
      %183 = vector.load %arg9[%c1_108, %c0_109, %c0_110] : memref<4x8x1xf32, #tpu.memory_space<vmem>>, vector<1x8x1xf32>
      %184 = vector.shape_cast %183 : vector<1x8x1xf32> to vector<8x1xf32>
      %185 = tpu.reciprocal %184 : vector<8x1xf32> -> vector<8x1xf32>
      %c1_111 = arith.constant 1 : index
      %c0_112 = arith.constant 0 : index
      %c0_113 = arith.constant 0 : index
      %186 = vector.load %arg10[%c1_111, %c0_112, %c0_113] : memref<4x8x8xf32, #tpu.memory_space<vmem>>, vector<1x8x8xf32>
      %187 = vector.shape_cast %186 : vector<1x8x8xf32> to vector<8x8xf32>
      %188 = vector.broadcast %185 : vector<8x1xf32> to vector<8x8xf32>
      %189 = arith.mulf %187, %188 : vector<8x8xf32>
      %c0_114 = arith.constant 0 : index
      %c0_115 = arith.constant 0 : index
      %c8 = arith.constant 8 : index
      %190 = vector.load %arg7[%c0_114, %c0_115, %c8] : memref<1x8x32xf32, #tpu.memory_space<vmem>>, vector<1x8x8xf32>
      %191 = vector.shape_cast %190 : vector<1x8x8xf32> to vector<8x8xf32>
      %192 = vector.shape_cast %189 : vector<8x8xf32> to vector<1x8x8xf32>
      tpu.vector_store %arg7[%c0_114, %c0_115, %c8], %192 {strides = array<i32>} : memref<1x8x32xf32, #tpu.memory_space<vmem>>, vector<1x8x8xf32>,
      %c2_116 = arith.constant 2 : index
      %c0_117 = arith.constant 0 : index
      %c0_118 = arith.constant 0 : index
      %193 = vector.load %arg9[%c2_116, %c0_117, %c0_118] : memref<4x8x1xf32, #tpu.memory_space<vmem>>, vector<1x8x1xf32>
      %194 = vector.shape_cast %193 : vector<1x8x1xf32> to vector<8x1xf32>
      %195 = tpu.reciprocal %194 : vector<8x1xf32> -> vector<8x1xf32>
      %c2_119 = arith.constant 2 : index
      %c0_120 = arith.constant 0 : index
      %c0_121 = arith.constant 0 : index
      %196 = vector.load %arg10[%c2_119, %c0_120, %c0_121] : memref<4x8x8xf32, #tpu.memory_space<vmem>>, vector<1x8x8xf32>
      %197 = vector.shape_cast %196 : vector<1x8x8xf32> to vector<8x8xf32>
      %198 = vector.broadcast %195 : vector<8x1xf32> to vector<8x8xf32>
      %199 = arith.mulf %197, %198 : vector<8x8xf32>
      %c0_122 = arith.constant 0 : index
      %c0_123 = arith.constant 0 : index
      %c16 = arith.constant 16 : index
      %200 = vector.load %arg7[%c0_122, %c0_123, %c16] : memref<1x8x32xf32, #tpu.memory_space<vmem>>, vector<1x8x8xf32>
      %201 = vector.shape_cast %200 : vector<1x8x8xf32> to vector<8x8xf32>
      %202 = vector.shape_cast %199 : vector<8x8xf32> to vector<1x8x8xf32>
      tpu.vector_store %arg7[%c0_122, %c0_123, %c16], %202 {strides = array<i32>} : memref<1x8x32xf32, #tpu.memory_space<vmem>>, vector<1x8x8xf32>,
      %c3_124 = arith.constant 3 : index
      %c0_125 = arith.constant 0 : index
      %c0_126 = arith.constant 0 : index
      %203 = vector.load %arg9[%c3_124, %c0_125, %c0_126] : memref<4x8x1xf32, #tpu.memory_space<vmem>>, vector<1x8x1xf32>
      %204 = vector.shape_cast %203 : vector<1x8x1xf32> to vector<8x1xf32>
      %205 = tpu.reciprocal %204 : vector<8x1xf32> -> vector<8x1xf32>
      %c3_127 = arith.constant 3 : index
      %c0_128 = arith.constant 0 : index
      %c0_129 = arith.constant 0 : index
      %206 = vector.load %arg10[%c3_127, %c0_128, %c0_129] : memref<4x8x8xf32, #tpu.memory_space<vmem>>, vector<1x8x8xf32>
      %207 = vector.shape_cast %206 : vector<1x8x8xf32> to vector<8x8xf32>
      %208 = vector.broadcast %205 : vector<8x1xf32> to vector<8x8xf32>
      %209 = arith.mulf %207, %208 : vector<8x8xf32>
      %c0_130 = arith.constant 0 : index
      %c0_131 = arith.constant 0 : index
      %c24 = arith.constant 24 : index
      %210 = vector.load %arg7[%c0_130, %c0_131, %c24] : memref<1x8x32xf32, #tpu.memory_space<vmem>>, vector<1x8x8xf32>
      %211 = vector.shape_cast %210 : vector<1x8x8xf32> to vector<8x8xf32>
      %212 = vector.shape_cast %209 : vector<8x8xf32> to vector<1x8x8xf32>
      tpu.vector_store %arg7[%c0_130, %c0_131, %c24], %212 {strides = array<i32>} : memref<1x8x32xf32, #tpu.memory_space<vmem>>, vector<1x8x8xf32>,
    } else {
    }
    return
  }
  func.func @transform_0(%arg0: i32, %arg1: i32, %arg2: memref<1xi32, #tpu.memory_space<smem>>, %arg3: memref<1xi32, #tpu.memory_space<smem>>) -> (i32, i32, i32) {
    %0 = arith.index_cast %arg1 : i32 to index
    %1 = memref.load %arg2[%0] : memref<1xi32, #tpu.memory_space<smem>>
    %c0_i32 = arith.constant 0 : i32
    %c0_i32_0 = arith.constant 0 : i32
    return %arg0, %1, %c0_i32 : i32, i32, i32
  }
  func.func @transform_1(%arg0: i32, %arg1: i32, %arg2: memref<1xi32, #tpu.memory_space<smem>>, %arg3: memref<1xi32, #tpu.memory_space<smem>>) -> (i32, i32, i32) {
    %0 = arith.index_cast %arg1 : i32 to index
    %1 = memref.load %arg3[%0] : memref<1xi32, #tpu.memory_space<smem>>
    %c0_i32 = arith.constant 0 : i32
    %c0_i32_0 = arith.constant 0 : i32
    return %arg0, %1, %c0_i32 : i32, i32, i32
  }
  func.func @transform_2(%arg0: i32, %arg1: i32, %arg2: memref<1xi32, #tpu.memory_space<smem>>, %arg3: memref<1xi32, #tpu.memory_space<smem>>) -> (i32, i32, i32) {
    %0 = arith.index_cast %arg1 : i32 to index
    %1 = memref.load %arg3[%0] : memref<1xi32, #tpu.memory_space<smem>>
    %c0_i32 = arith.constant 0 : i32
    %c0_i32_0 = arith.constant 0 : i32
    return %arg0, %1, %c0_i32 : i32, i32, i32
  }
  func.func @transform_3(%arg0: i32, %arg1: i32, %arg2: memref<1xi32, #tpu.memory_space<smem>>, %arg3: memref<1xi32, #tpu.memory_space<smem>>) -> (i32, i32, i32) {
    %0 = arith.index_cast %arg1 : i32 to index
    %1 = memref.load %arg2[%0] : memref<1xi32, #tpu.memory_space<smem>>
    %c0_i32 = arith.constant 0 : i32
    %c0_i32_0 = arith.constant 0 : i32
    return %arg0, %1, %c0_i32 : i32, i32, i32
  }
}

</mosaic_0001>

<bundles_post_ra>
// kernel: causal_self_attention.5
= control target key start
LH: loop header
LB: loop body
LE: loop exit
PB: predicated region body
PF: predicated region fallthrough
CT: control target
= control target key end

     0   :  { %8 = vsyncpa [#allocation3], 0  ;;  %s204_s0 = inlined_call_operand.vmem [shape: f32[16,32], index: 0, kind: input, shape index: {}]   ;;  %s205_s1 = inlined_call_operand.hbm [shape: f32[32,32], index: 1, kind: input, shape index: {}]   ;;  %s206_s2 = inlined_call_operand.vmem [shape: f32[1,32], index: 2, kind: input, shape index: {}]   ;;  %s207_s3 = inlined_call_operand.hbm [shape: f32[16,32], index: 3, kind: output, shape index: {}]  }
   0x1   :  { %9 = vsyncpa [#allocation4], 0  ;;  %s16_s14 = sshll.u32 %s205_s1, 4  ;;  %s155_s15 = smov [#allocation2]   ;;  %s17_s14 = int_to_ptr.hbm [resolvable:$true] %s16_s14 }
   0x2   :  { %s18_s16 = sshll.u32 %s155_s15, 4  ;;  %s156_s17 = smov 128   ;;  %s19_s16 = int_to_ptr.vmem [resolvable:$true] %s18_s16 }
   0x3   :  { %s157_s18 = smov 8  }
   0x4   :  { %24 = dma.hbm_to_vmem [thread:$0]  %s17_s14, 512, %s19_s16, [#allocation3], %s156_s17, %s156_s17, %s157_s18  }
   0x5   :  { %151 = dma.done.wait [#allocation3], 512  }
   0x6   :  { %152 = vsyncadd [#allocation3], 4294966784  ;;  %v36_v0 = vld [vmem:[#allocation2 + $0x18] sm:$0xff]  ;;  %v35_v1 = vld [vmem:[#allocation2 + $0x10] sm:$0xff]  ;;  %vm41_vm0 = vcmask 261120   ;;  %s158_s24 = smov [#allocation5]  }
   0x7   :  { %60 = vmatpush.msra.mxu0 %v36_v0  ;;  %94 = vmatpush.msra.mxu1 %v36_v0  ;;  %v34_v2 = vld [vmem:[#allocation2 + $0x8] sm:$0xff]  ;;  %v33_v3 = vld [vmem:[#allocation2] sm:$0xff]  ;;  %s77_s25 = sshll.u32 %s158_s24, 4  ;;  %s79_s28 = sshll.u32 %s207_s3, 4  ;;  %s78_s25 = int_to_ptr.vmem [resolvable:$true] %s77_s25  ;;  %s80_s28 = int_to_ptr.hbm [resolvable:$true] %s79_s28 }
   0x8   :  { %v31_v4 = vld [vmem:[%s204_s0] sm:$0xff]  ;;  %v32_v5 = vld [vmem:[%s204_s0 + $0x8] sm:$0xff] }
   0x9   :  { %61 = vmatpush.msra.mxu0 %v35_v1  ;;  %95 = vmatpush.msra.mxu1 %v35_v1  ;;  %v102_v6 = vld [vmem:[%s206_s2] ss:$0 sm:$0xff] }
   0xb   :  { %62 = vmatpush.msra.mxu0 %v34_v2  ;;  %96 = vmatpush.msra.mxu1 %v34_v2 }
   0xd   :  { %63 = vmatpush.msra.mxu0 %v33_v3  ;;  %97 = vmatpush.msra.mxu1 %v33_v3 }
   0xe   :  { %92 = vmatmul.msk.f32.vlgmr.msra.gmra.mxu0 %vm41_vm0, %v31_v4  ;;  %93 = vmatmul.msk.f32.vlgmr.msra.gmra.mxu1 %vm41_vm0, %v32_v5 }
  0x8b   :  { %v65_v7 = vpop.f32.mrf.mxu0  ;;  %v68_v8 = vpop.f32.mrf.mxu1 }
  0x8c   :  { %v66_v9 = vadd.f32 %v102_v6, %v65_v7  ;;  %v69_v10 = vadd.f32 %v102_v6, %v68_v8 }
  0x8e   :  { %71 = vst.msk [vmem:[#allocation5] sm:$0xff] %vm41_vm0, %v66_v9 }
  0x8f   :  { %72 = vst.msk [vmem:[#allocation5 + $0x8] sm:$0xff] %vm41_vm0, %v69_v10 }
  0x90   :  { %85 = dma.vmem_to_hbm [thread:$0]  %s78_s25, 256, %s80_s28, [#allocation4], %s156_s17, %s156_s17, %s157_s18  }
  0x91   :  { %153 = dma.done.wait [#allocation4], 256  }
  0x92   :  { %154 = vsyncadd [#allocation4], 4294967040 }
  0x93   :  { %90 = vsyncpa [#allocation3], 1 }
  0x94   :  { %91 = vsyncpa [#allocation4], 1 }

// kernel: causal_self_attention.3
= control target key start
LH: loop header
LB: loop body
LE: loop exit
PB: predicated region body
PF: predicated region fallthrough
CT: control target
= control target key end

     0   :  { %15 = vsyncpa [#allocation3], 0  ;;  %s443_s0 = inlined_call_operand.hbm [shape: f32[16,32], index: 0, kind: input, shape index: {}]   ;;  %s444_s1 = inlined_call_operand.hbm [shape: f32[32,32], index: 1, kind: input, shape index: {}]   ;;  %s445_s2 = inlined_call_operand.vmem [shape: f32[1,32], index: 2, kind: input, shape index: {}]   ;;  %s446_s3 = inlined_call_operand.hbm [shape: f32[32,32], index: 3, kind: input, shape index: {}]   ;;  %s447_s4 = inlined_call_operand.vmem [shape: f32[1,32], index: 4, kind: input, shape index: {}]   ;;  %s448_s5 = inlined_call_operand.hbm [shape: f32[32,32], index: 5, kind: input, shape index: {}]   ;;  %s449_s6 = inlined_call_operand.vmem [shape: f32[1,32], index: 6, kind: input, shape index: {}]   ;;  %s450_s7 = inlined_call_operand.vmem [shape: f32[16,32], index: 7, kind: output, shape index: {0}]   ;;  %s451_s8 = inlined_call_operand.vmem [shape: f32[16,32], index: 8, kind: output, shape index: {1}]   ;;  %s452_s9 = inlined_call_operand.vmem [shape: f32[16,32], index: 9, kind: output, shape index: {2}]  }
   0x1   :  { %16 = vsyncpa [#allocation5], 0 }
   0x2   :  { %17 = vsyncpa [#allocation8], 0  ;;  %s35_s11 = sshll.u32 %s444_s1, 4  ;;  %s336_s12 = smov [#allocation4]   ;;  %s36_s11 = int_to_ptr.hbm [resolvable:$true] %s35_s11 }
   0x3   :  { %s37_s13 = sshll.u32 %s336_s12, 4  ;;  %s22_s16 = sshll.u32 %s443_s0, 4  ;;  %s38_s13 = int_to_ptr.vmem [resolvable:$true] %s37_s13  ;;  %s23_s16 = int_to_ptr.hbm [resolvable:$true] %s22_s16 }
   0x4   :  { %s337_s17 = smov 128   ;;  %s338_s18 = smov 8  }
   0x5   :  { %43 = dma.hbm_to_vmem [thread:$0]  %s36_s11, 512, %s38_s13, [#allocation5], %s337_s17, %s337_s17, %s338_s18  }
   0x6   :  { %s339_s19 = smov [#allocation2]   ;;  %s50_s23 = sshll.u32 %s446_s3, 4  ;;  %s51_s23 = int_to_ptr.hbm [resolvable:$true] %s50_s23 }
   0x7   :  { %s24_s20 = sshll.u32 %s339_s19, 4  ;;  %s65_s25 = sshll.u32 %s448_s5, 4  ;;  %s25_s20 = int_to_ptr.vmem [resolvable:$true] %s24_s20  ;;  %s66_s25 = int_to_ptr.hbm [resolvable:$true] %s65_s25 }
   0x8   :  { %30 = dma.hbm_to_vmem [thread:$0]  %s23_s16, 256, %s25_s20, [#allocation3], %s337_s17, %s337_s17, %s338_s18  }
   0x9   :  { %s340_s26 = smov [#allocation6]   ;;  %s341_s0 = smov [#allocation7]  }
   0xa   :  { %s52_s27 = sshll.u32 %s340_s26, 4  ;;  %s67_s28 = sshll.u32 %s341_s0, 4  ;;  %s53_s27 = int_to_ptr.vmem [resolvable:$true] %s52_s27  ;;  %s68_s28 = int_to_ptr.vmem [resolvable:$true] %s67_s28 }
   0xb   :  { %58 = dma.hbm_to_vmem [thread:$0]  %s51_s23, 512, %s53_s27, [#allocation5], %s337_s17, %s337_s17, %s338_s18  }
   0xc   :  { %73 = dma.hbm_to_vmem [thread:$0]  %s66_s25, 512, %s68_s28, [#allocation8], %s337_s17, %s337_s17, %s338_s18  }
   0xd   :  { %330 = dma.done.wait [#allocation3], 256  }
   0xe   :  { %331 = vsyncadd [#allocation3], 4294967040 }
   0xf   :  { %332 = dma.done.wait [#allocation5], 1024  }
  0x10   :  { %333 = vsyncadd [#allocation5], 4294966272 }
  0x11   :  { %334 = dma.done.wait [#allocation8], 512  }
  0x12   :  { %335 = vsyncadd [#allocation8], 4294966784  ;;  %v170_v0 = vld [vmem:[#allocation7 + $0x18] sm:$0xff]  ;;  %v169_v1 = vld [vmem:[#allocation7 + $0x10] sm:$0xff]  ;;  %vm102_vm0 = vcmask 261120  }
  0x13   :  { %187 = vmatpush.msra.mxu2 %v170_v0  ;;  %v168_v2 = vld [vmem:[#allocation7 + $0x8] sm:$0xff]  ;;  %v137_v3 = vld [vmem:[#allocation6 + $0x18] sm:$0xff]  ;;  %v136_v5 = vld [vmem:[#allocation6 + $0x10] sm:$0xff] }
  0x14   :  { %154 = vmatpush.msra.mxu1 %v137_v3  ;;  %v97_v4 = vld [vmem:[#allocation4 + $0x18] sm:$0xff]  ;;  %v96_v6 = vld [vmem:[#allocation4 + $0x10] sm:$0xff]  ;;  %v167_v7 = vld [vmem:[#allocation7] sm:$0xff] }
  0x15   :  { %188 = vmatpush.msra.mxu2 %v169_v1  ;;  %221 = vmatpush.msra.mxu3 %v97_v4  ;;  %v135_v8 = vld [vmem:[#allocation6 + $0x8] sm:$0xff]  ;;  %v92_v9 = vld [vmem:[#allocation2] sm:$0xff]  ;;  %v134_v11 = vld [vmem:[#allocation6] sm:$0xff] }
  0x16   :  { %155 = vmatpush.msra.mxu1 %v136_v5  ;;  %v95_v10 = vld [vmem:[#allocation4 + $0x8] sm:$0xff]  ;;  %121 = vmatpush.msra.mxu0 %v97_v4  ;;  %v94_v12 = vld [vmem:[#allocation4] sm:$0xff]  ;;  %v93_v13 = vld [vmem:[#allocation2 + $0x8] sm:$0xff] }
  0x17   :  { %189 = vmatpush.msra.mxu2 %v168_v2  ;;  %222 = vmatpush.msra.mxu3 %v96_v6  ;;  %v231_v14 = vld [vmem:[%s447_s4] ss:$0 sm:$0xff] }
  0x18   :  { %156 = vmatpush.msra.mxu1 %v135_v8  ;;  %122 = vmatpush.msra.mxu0 %v96_v6  ;;  %v233_v17 = vld [vmem:[%s445_s2] ss:$0 sm:$0xff] }
  0x19   :  { %190 = vmatpush.msra.mxu2 %v167_v7  ;;  %223 = vmatpush.msra.mxu3 %v95_v10  ;;  %v232_v18 = vld [vmem:[%s449_s6] ss:$0 sm:$0xff] }
  0x1a   :  { %219 = vmatmul.msk.f32.vlgmr.msra.gmra.mxu2 %vm102_vm0, %v92_v9  ;;  %157 = vmatpush.msra.mxu1 %v134_v11 }
  0x1b   :  { %217 = vmatmul.msk.f32.vlgmr.msra.gmra.mxu1 %vm102_vm0, %v92_v9  ;;  %224 = vmatpush.msra.mxu3 %v94_v12 }
  0x1c   :  { %216 = vmatmul.msk.f32.vlgmr.msra.gmra.mxu3 %vm102_vm0, %v93_v13  ;;  %123 = vmatpush.msra.mxu0 %v95_v10 }
  0x1e   :  { %124 = vmatpush.msra.mxu0 %v94_v12 }
  0x1f   :  { %215 = vmatmul.msk.f32.vlgmr.msra.gmra.mxu0 %vm102_vm0, %v92_v9 }
  0x22   :  { %220 = vmatmul.msk.f32.gmra.mxu2 %vm102_vm0, %v93_v13 }
  0x23   :  { %218 = vmatmul.msk.f32.gmra.mxu1 %vm102_vm0, %v93_v13 }
  0x98   :  { %v159_v15 = vpop.f32.mrf.mxu1 }
  0x99   :  { %v160_v16 = vadd.f32 %v231_v14, %v159_v15 }
  0x9b   :  { %165 = vst.msk [vmem:[%s451_s8] sm:$0xff] %vm102_vm0, %v160_v16 }
  0x9c   :  { %v126_v19 = vpop.f32.mrf.mxu0 }
  0x9d   :  { %v192_v20 = vpop.f32.mrf.mxu2  ;;  %v127_v21 = vadd.f32 %v233_v17, %v126_v19 }
  0x9e   :  { %v193_v22 = vadd.f32 %v232_v18, %v192_v20 }
  0x9f   :  { %132 = vst.msk [vmem:[%s450_s7] sm:$0xff] %vm102_vm0, %v127_v21  ;;  %v129_v23 = vpop.f32.mrf.mxu3 }
  0xa0   :  { %198 = vst.msk [vmem:[%s452_s9] sm:$0xff] %vm102_vm0, %v193_v22  ;;  %v130_v24 = vadd.f32 %v233_v17, %v129_v23  ;;  %v162_v25 = vpop.f32.mrf.mxu1 }
  0xa1   :  { %v163_v26 = vadd.f32 %v231_v14, %v162_v25 }
  0xa2   :  { %133 = vst.msk [vmem:[%s450_s7 + $0x8] sm:$0xff] %vm102_vm0, %v130_v24 }
  0xa3   :  { %166 = vst.msk [vmem:[%s451_s8 + $0x8] sm:$0xff] %vm102_vm0, %v163_v26 }
  0xa5   :  { %v195_v27 = vpop.f32.mrf.mxu2 }
  0xa6   :  { %v196_v28 = vadd.f32 %v232_v18, %v195_v27 }
  0xa8   :  { %199 = vst.msk [vmem:[%s452_s9 + $0x8] sm:$0xff] %vm102_vm0, %v196_v28 }
  0xa9   :  { %212 = vsyncpa [#allocation3], 1 }
  0xaa   :  { %213 = vsyncpa [#allocation5], 1 }
  0xab   :  { %214 = vsyncpa [#allocation8], 1 }

// kernel: causal_self_attention.4
= control target key start
LH: loop header
LB: loop body
LE: loop exit
PB: predicated region body
PF: predicated region fallthrough
CT: control target
= control target key end

     0   :  { %s1055_s22 = smov 0   ;;  %s1057_s23 = smov 0   ;;  %s1207_s0 = inlined_call_operand.<no memory space> [shape: s32[1], index: 0, kind: input, shape index: {}, may-alias: {0,1}]   ;;  %s1208_s1 = inlined_call_operand.<no memory space> [shape: s32[1], index: 1, kind: input, shape index: {}, may-alias: {0,1}]   ;;  %s1209_s2 = inlined_call_operand.vmem [shape: f32[2,8,32], index: 2, kind: input, shape index: {}]   ;;  %s1210_s3 = inlined_call_operand.vmem [shape: f32[2,8,32], index: 3, kind: input, shape index: {}]   ;;  %s1211_s4 = inlined_call_operand.vmem [shape: f32[2,8,32], index: 4, kind: input, shape index: {}]   ;;  %s1212_s5 = inlined_call_operand.vmem [shape: f32[2,8,32], index: 5, kind: output, shape index: {}]  }
   0x1   :  { %10 = sst [smem:[#allocation6]] %s1207_s0  ;;  %s1059_s24 = smov 0  }
   0x2   :  { %11 = sst [smem:[#allocation7]] %s1208_s1 }
   0x3 LB: > { %s29_s0 = sadd.s32 1, %s1003_s23  ;;  %p899_p0 = scmp.ge.s32.totalorder %s1007_s24, 1  ;;  %s1007_s24 = sphi %s1059_s24, %s17_s24   ;;  %s1003_s23 = sphi %s1057_s23, %s1222_s23   ;;  %s999_s22 = sphi %s1055_s22, %s1221_s22  }
   0x4   : > { %p31_p1 = scmp.ge.s32.totalorder %s29_s0, 2  ;;  %p201_p2 = scmp.lt.s32.totalorder %s1007_s24, 3 }
   0x6   : > { %s1224_s0 = smov (%p31_p1, %s29_s0), 0  ;;  %p202_p3 = pnand %p899_p0, %p201_p2 }
   0x7   : > { %s1073_s1 = sld [smem:[#allocation6]] (!%p202_p3)  ;;  %p248_p4 = scmp.lt.s32.totalorder (!%p202_p3), %s999_s22, 1 }
   0x8   : > { %205 = sbr.rel (%p202_p3) target bundleno = 1177 (0x499), region = 32  ;;  %s1075_s25 = sld [smem:[#allocation7]] (!%p202_p3) }
   0xd   : > { %s1226_s22 = smov (!%p248_p4, %s999_s22), 1  ;;  %p250_p5 = scmp.lt.s32.totalorder %s1073_s1, 0 }
   0xe   : > { %p259_p6 = scmp.lt.s32.totalorder %s1075_s25, 0  ;;  %p904_p7 = scmp.ne.s32.totalorder %s1075_s25, 0 }
   0xf   : > { %s251_s26 = scalar_select %p250_p5, %s1073_s1, 0 }
  0x10   : > { %s260_s27 = scalar_select %p259_p6, %s1075_s25, 0 }
  0x11   : > { %s252_s28 = sadd.s32 %s251_s26, %s1226_s22  ;;  %288 = sbr.rel (%p904_p7) target bundleno = 35 (0x23), region = 36 }
  0x12   : > { %s1081_s29 = sshll.u32 %s252_s28, 3  ;;  %s261_s30 = sadd.s32 %s260_s27, %s1226_s22 }
  0x13   : > { %s254_s8 = scalar_lea.vmem %s1209_s2, %s1081_s29  ;;  %s1087_s9 = sshll.u32 %s261_s30, 3 }
  0x14   : > { %s263_s12 = scalar_lea.vmem %s1210_s3, %s1087_s9  ;;  %s272_s15 = scalar_lea.vmem %s1211_s4, %s1087_s9 }
  0x15   : > { %s1101_s18 = scalar_lea.vmem %s1212_s5, %s1081_s29 }
  0x16   : > { %vm289_vm0 = vcmask 7168   ;;  %v1009_v0 = vmov -inf   ;;  %v1010_v1 = vmov 0.0   ;;  %vm298_vm1 = vcmask 64512  }
  0x17   : > { %290 = vst.msk [vmem:[#allocation2] sm:$0xff] %vm289_vm0, %v1009_v0 }
  0x18   : > { %291 = vst.msk [vmem:[#allocation2 + $0x8] sm:$0xff] %vm289_vm0, %v1009_v0 }
  0x19   : > { %292 = vst.msk [vmem:[#allocation2 + $0x10] sm:$0xff] %vm289_vm0, %v1009_v0 }
  0x1a   : > { %293 = vst.msk [vmem:[#allocation2 + $0x18] sm:$0xff] %vm289_vm0, %v1009_v0 }
  0x1b   : > { %294 = vst.msk [vmem:[#allocation3] sm:$0xff] %vm289_vm0, %v1010_v1 }
  0x1c   : > { %295 = vst.msk [vmem:[#allocation3 + $0x8] sm:$0xff] %vm289_vm0, %v1010_v1 }
  0x1d   : > { %296 = vst.msk [vmem:[#allocation3 + $0x10] sm:$0xff] %vm289_vm0, %v1010_v1 }
  0x1e   : > { %297 = vst.msk [vmem:[#allocation3 + $0x18] sm:$0xff] %vm289_vm0, %v1010_v1 }
  0x1f   : > { %299 = vst.msk [vmem:[#allocation4] sm:$0xff] %vm298_vm1, %v1010_v1 }
  0x20   : > { %300 = vst.msk [vmem:[#allocation4 + $0x8] sm:$0xff] %vm298_vm1, %v1010_v1 }
  0x21   : > { %301 = vst.msk [vmem:[#allocation4 + $0x10] sm:$0xff] %vm298_vm1, %v1010_v1 }
  0x22   : > { %302 = vst.msk [vmem:[#allocation4 + $0x18] sm:$0xff] %vm298_vm1, %v1010_v1 }
  0x23 PF: > { %v315_v2 = vld [vmem:[%s263_s12] sm:$0xff]  ;;  %vm317_vm2 = vcmask 64512   ;;  %s1011_s19 = smov 120   ;;  %s1012_s20 = smov 112   ;;  %v303_v4 = vlaneseq  ;;  %v1014_v14 = vmov 0   ;;  %vm367_vm4 = vcmask 7168  }
  0x24   : > { %907 = vmatpush.xpose.msk.msra.mxu0 %vm317_vm2, %v315_v2  ;;  %v314_v3 = vld [vmem:[%s254_s8] sm:$0xff]  ;;  %404 = vrot.lane.b32.xlu1 %v315_v2, %s1011_s19  ;;  %s1013_s21 = smov 104   ;;  %s905_s22 = sshll.u32 %s1073_s1, 3  ;;  %v432_v36 = vld [vmem:[#allocation2 + $0x8] sm:$0xff]  ;;  %v615_v41 = vld [vmem:[#allocation2 + $0x18] sm:$0xff] }
  0x25   : > { %496 = vrot.lane.b32.xlu2 %v315_v2, %s1012_s20  ;;  %s906_s26 = sshll.u32 %s1075_s25, 3  ;;  %v304_v5 = vshrl.u32 %v303_v4, 7  ;;  %v309_v6 = vand.u32 127, %v303_v4  ;;  %v306_v7 = vstv %s905_s22  ;;  %956 = vset.pattern.permute.xlu0 %v1014_v14  ;;  %v345_v20 = vld [vmem:[#allocation2] sm:$0xff]  ;;  %v524_v53 = vld [vmem:[#allocation2 + $0x10] sm:$0xff]  ;;  %p919_p8 = scmp.ne.s32.totalorder %s1075_s25, %s1073_s1 }
  0x26   : > { %v311_v8 = vstv %s906_s26  ;;  %957 = vset.pattern.permute.xlu2 %v1014_v14  ;;  %958 = vset.pattern.permute.xlu1 %v1014_v14  ;;  %v316_v24 = vld [vmem:[%s272_s15] sm:$0xff]  ;;  %s1016_s1 = smov (!%p919_p8), 24   ;;  %s1017_s25 = smov (!%p919_p8), 8  }
  0x27   : > { %908 = vmatmul.msk.f32.vlgmr.msra.gmra.mxu0 %vm317_vm2, %v314_v3  ;;  %v307_v9 = vadd.s32 %v306_v7, %v304_v5  ;;  %v312_v10 = vadd.s32 %v311_v8, %v309_v6  ;;  %394 = vmatpush.msra.mxu1 %v316_v24  ;;  %v369_v4 = vld [vmem:[#allocation4] sm:$0xff]  ;;  %s1018_s29 = smov (!%p919_p8), 16  }
  0x29   : > { %vm313_vm3 = vcmp.ge.s32.totalorder %v307_v9, %v312_v10 }
  0x2c   : > { %402 = vrot.lane.b32.xlu1 %v314_v3, %s1011_s19 }
  0x2d   : > { %587 = vrot.lane.b32.xlu2 %v315_v2, %s1013_s21 }
  0x34   : > { %494 = vrot.lane.b32.xlu1 %v314_v3, %s1012_s20 }
  0x35   : > { %585 = vrot.lane.b32.xlu2 %v314_v3, %s1013_s21 }
  0x7f   : > { %v497_v16 = vpop.permute.xlu2 %496 }
  0x80   : > { %913 = vmatpush.xpose.msk.msrb.mxu1 %vm317_vm2, %v497_v16 }
  0x87   : > { %v588_v18 = vpop.permute.xlu2 %587 }
  0x88   : > { %916 = vmatpush.xpose.msk.msrb.mxu0 %vm317_vm2, %v588_v18 }
  0x8f   : > { %v586_v19 = vpop.permute.xlu2 %585 }
  0x90   : > { %917 = vmatmul.msk.f32.vlgmr.msrb.gmra.mxu0 %vm317_vm2, %v586_v19  ;;  %v449_v19 = vld [vmem:[#allocation3 + $0x8] sm:$0xff] }
  0x96   : > { %v405_v15 = vpop.permute.xlu1 %404 }
  0x97   : > { %910 = vmatpush.xpose.msk.msra.mxu2 %vm317_vm2, %v405_v15 }
  0x9e   : > { %v403_v17 = vpop.permute.xlu1 %402 }
  0x9f   : > { %911 = vmatmul.msk.f32.vlgmr.msra.gmra.mxu2 %vm317_vm2, %v403_v17 }
  0xa4   : > { %v341_v11 = vpop.f32.mrf.mxu0 }
  0xa5   : > { %v344_v12 = vsel %vm313_vm3, %v341_v11, -1e+30 }
  0xa6   : > { %v346_v13 = vsel %vm317_vm2, %v344_v12, -inf  ;;  %v495_v35 = vpop.permute.xlu1 %494 }
  0xa7   : > { %347 = vmax.xlane.f32.xlu0 %v346_v13 }
 0x10d   : > { %v610_v29 = vpop.f32.mrf.mxu0 }
 0x10e   : > { %v613_v31 = vsel %vm313_vm3, %v610_v29, -1e+30 }
 0x10f   : > { %v616_v32 = vsel %vm317_vm2, %v613_v31, -inf }
 0x11a   : > { %v348_v21 = vpop.xlane.xlu0 %347 }
 0x11b   : > { %v349_v22 = vmax.f32 %v345_v20, %v348_v21 }
 0x11d   : > { %v350_v23 = vsub.f32 %v345_v20, %v349_v22  ;;  %401 = vst.msk [vmem:[#allocation2] sm:$0xff] %vm367_vm4, %v349_v22  ;;  %355 = vperm.xlu0 %956, %v349_v22  }
 0x11f   : > { %v351_v48 = vmul.f32 1.442695, %v350_v23  ;;  %v632_v23 = vld [vmem:[#allocation3 + $0x18] sm:$0xff] }
 0x122   : > { %v427_v25 = vpop.f32.mrf.mxu2 }
 0x123   : > { %v430_v26 = vsel %vm313_vm3, %v427_v25, -1e+30 }
 0x124   : > { %v433_v28 = vsel %vm317_vm2, %v430_v26, -inf }
 0x125   : > { %434 = vmax.xlane.f32.xlu1 %v433_v28 }
 0x147   : > { %617 = vmax.xlane.f32.xlu0 %v616_v32  ;;  %v640_v32 = vld [vmem:[#allocation4 + $0x18] sm:$0xff] }
 0x15b   : > { %465 = vrot.lane.b32.xlu0 %v316_v24, %s1011_s19 }
 0x18f   : > { %v356_v27 = vpop.permute.xlu0 %355 }
 0x190   : > { %v358_v30 = vsub.f32 %v344_v12, %v356_v27  ;;  %v457_v27 = vld [vmem:[#allocation4 + $0x8] sm:$0xff] }
 0x192   : > { %v359_v33 = vmul.f32 1.442695, %v358_v30 }
 0x194   : > { %959 = vpow2.f32 %v359_v33 }
 0x195   : > { %961 = vpow2.f32 %v351_v48 }
 0x198   : > { %v435_v37 = vpop.xlane.xlu1 %434 }
 0x199   : > { %v436_v38 = vmax.f32 %v432_v36, %v435_v37 }
 0x19a   : > { %v1131_v34 = vpop.eup %959 }
 0x19b   : > { %909 = vmatmul.msk.f32.vlgmr.msra.gmra.mxu1 %vm317_vm2, %v1131_v34  ;;  %v437_v39 = vsub.f32 %v432_v36, %v436_v38  ;;  %493 = vst.msk [vmem:[#allocation2 + $0x8] sm:$0xff] %vm367_vm4, %v436_v38  ;;  %v1142_v50 = vpop.eup %961  ;;  %v363_v10 = vsel %vm317_vm2, %v1131_v34, 0.0 }
 0x19d   : > { %v438_v49 = vmul.f32 1.442695, %v437_v39 }
 0x19f   : > { %963 = vpow2.f32 %v438_v49 }
 0x1a3   : > { %914 = vmatmul.msk.f32.vlgmr.msrb.gmra.mxu1 %vm317_vm2, %v495_v35  ;;  %v361_v35 = vld [vmem:[#allocation3] sm:$0xff] }
 0x1a5   : > { %v964_v51 = vpop.eup %963 }
 0x1a6   : > { %v450_v20 = vmul.f32 %v964_v51, %v449_v19 }
 0x1ba   : > { %v618_v42 = vpop.xlane.xlu0 %617 }
 0x1bb   : > { %v619_v43 = vmax.f32 %v615_v41, %v618_v42 }
 0x1bd   : > { %v620_v44 = vsub.f32 %v615_v41, %v619_v43  ;;  %675 = vst.msk [vmem:[#allocation2 + $0x18] sm:$0xff] %vm367_vm4, %v619_v43  ;;  %v541_v41 = vld [vmem:[#allocation3 + $0x10] sm:$0xff] }
 0x1bf   : > { %v621_v8 = vmul.f32 1.442695, %v620_v44 }
 0x1cd   : > { %v466_v52 = vpop.permute.xlu0 %465 }
 0x1ce   : > { %486 = vmatpush.msra.mxu3 %v466_v52 }
 0x218   : > { %v396_v40 = vpop.f32.mrf.mxu1 }
 0x220   : > { %v519_v45 = vpop.f32.mrf.mxu1 }
 0x221   : > { %v522_v46 = vsel %vm313_vm3, %v519_v45, -1e+30  ;;  %v549_v45 = vld [vmem:[#allocation4 + $0x10] sm:$0xff] }
 0x222   : > { %v525_v47 = vsel %vm317_vm2, %v522_v46, -inf }
 0x223   : > { %526 = vmax.xlane.f32.xlu2 %v525_v47 }
 0x23b   : > { %442 = vperm.xlu2 %957, %v436_v38   ;;  %v362_v38 = vmul.f32 %v1142_v50, %v361_v35 }
 0x243   : > { %625 = vperm.xlu2 %957, %v619_v43  }
 0x24b   : > { %647 = vrot.lane.b32.xlu2 %v316_v24, %s1013_s21 }
 0x253   : > { %372 = vperm.xlu2 %957, %v1142_v50  }
 0x25b   : > { %460 = vperm.xlu2 %957, %v964_v51  }
 0x296   : > { %v527_v54 = vpop.xlane.xlu2 %526 }
 0x297   : > { %v528_v55 = vmax.f32 %v524_v53, %v527_v54 }
 0x299   : > { %v529_v56 = vsub.f32 %v524_v53, %v528_v55  ;;  %584 = vst.msk [vmem:[#allocation2 + $0x10] sm:$0xff] %vm367_vm4, %v528_v55  ;;  %534 = vperm.xlu1 %958, %v528_v55  }
 0x29b   : > { %v530_v11 = vmul.f32 1.442695, %v529_v56 }
 0x29e   : > { %v443_v57 = vpop.permute.xlu2 %442 }
 0x29f   : > { %v445_v58 = vsub.f32 %v430_v26, %v443_v57 }
 0x2a1   : > { %v446_v59 = vmul.f32 1.442695, %v445_v58  ;;  %556 = vrot.lane.b32.xlu1 %v316_v24, %s1012_s20 }
 0x2a3   : > { %965 = vpow2.f32 %v446_v59 }
 0x2a6   : > { %v626_v60 = vpop.permute.xlu2 %625 }
 0x2a7   : > { %v628_v61 = vsub.f32 %v613_v31, %v626_v60 }
 0x2a9   : > { %v966_v62 = vpop.eup %965  ;;  %v629_v63 = vmul.f32 1.442695, %v628_v61 }
 0x2aa   : > { %912 = vmatmul.msk.f32.vlgmr.msra.gmra.mxu3 %vm317_vm2, %v966_v62  ;;  %v451_v0 = vsel %vm317_vm2, %v966_v62, 0.0 }
 0x2ab   : > { %967 = vpow2.f32 %v629_v63  ;;  %452 = vadd.xlane.f32.xlu0 %v451_v0 }
 0x2ac   : > { %969 = vpow2.f32 %v621_v8 }
 0x2ad   : > { %971 = vpow2.f32 %v530_v11 }
 0x2ae   : > { %v648_v1 = vpop.permute.xlu2 %647 }
 0x2af   : > { %668 = vmatpush.msrb.mxu2 %v648_v1 }
 0x2b1   : > { %v968_v2 = vpop.eup %967 }
 0x2b2   : > { %918 = vmatmul.msk.f32.vlgmr.msrb.gmra.mxu2 %vm317_vm2, %v968_v2  ;;  %v634_v3 = vsel %vm317_vm2, %v968_v2, 0.0  ;;  %v970_v9 = vpop.eup %969 }
 0x2b3   : > { %635 = vadd.xlane.f32.xlu0 %v634_v3  ;;  %v972_v12 = vpop.eup %971  ;;  %v633_v24 = vmul.f32 %v970_v9, %v632_v23 }
 0x2b4   : > { %v542_v42 = vmul.f32 %v972_v12, %v541_v41 }
 0x2b6   : > { %v373_v5 = vpop.permute.xlu2 %372 }
 0x2b7   : > { %v375_v6 = vmul.f32 %v373_v5, %v369_v4 }
 0x2b9   : > { %v399_v7 = vadd.f32 %v396_v40, %v375_v6 }
 0x2bb   : > { %400 = vst.msk [vmem:[#allocation4] sm:$0xff] %vm317_vm2, %v399_v7 }
 0x2be   : > { %v461_v28 = vpop.permute.xlu2 %460 }
 0x2bf   : > { %v463_v29 = vmul.f32 %v461_v28, %v457_v27 }
 0x2c7   : > { %643 = vperm.xlu0 %956, %v970_v9  }
 0x2cb   : > { %364 = vadd.xlane.f32.xlu1 %v363_v10 }
 0x2e4   : > { %552 = vperm.xlu1 %958, %v972_v12  }
 0x30b   : > { %v535_v13 = vpop.permute.xlu1 %534 }
 0x30c   : > { %v537_v14 = vsub.f32 %v522_v46, %v535_v13 }
 0x30e   : > { %v538_v15 = vmul.f32 1.442695, %v537_v14 }
 0x310   : > { %973 = vpow2.f32 %v538_v15 }
 0x313   : > { %v557_v16 = vpop.permute.xlu1 %556 }
 0x314   : > { %577 = vmatpush.msrb.mxu3 %v557_v16 }
 0x316   : > { %v974_v17 = vpop.eup %973 }
 0x317   : > { %915 = vmatmul.msk.f32.vlgmr.msrb.gmra.mxu3 %vm317_vm2, %v974_v17  ;;  %v543_v18 = vsel %vm317_vm2, %v974_v17, 0.0 }
 0x318   : > { %544 = vadd.xlane.f32.xlu2 %v543_v18 }
 0x31e   : > { %v453_v21 = vpop.xlane.xlu0 %452 }
 0x31f   : > { %v454_v22 = vadd.f32 %v453_v21, %v450_v20 }
 0x321   : > { %455 = vst.msk [vmem:[#allocation3 + $0x8] sm:$0xff] %vm367_vm4, %v454_v22 }
 0x326   : > { %v636_v25 = vpop.xlane.xlu0 %635 }
 0x327   : > { %v637_v26 = vadd.f32 %v636_v25, %v633_v24 }
 0x329   : > { %638 = vst.msk [vmem:[#allocation3 + $0x18] sm:$0xff] %vm367_vm4, %v637_v26 }
 0x32d   : > { %v488_v30 = vpop.f32.mrf.mxu3 }
 0x32e   : > { %v491_v31 = vadd.f32 %v488_v30, %v463_v29 }
 0x330   : > { %492 = vst.msk [vmem:[#allocation4 + $0x8] sm:$0xff] %vm317_vm2, %v491_v31 }
 0x335   : > { %v670_v36 = vpop.f32.mrf.mxu2 }
 0x339   : > { %v644_v33 = vpop.permute.xlu0 %643 }
 0x33a   : > { %v646_v34 = vmul.f32 %v644_v33, %v640_v32 }
 0x33c   : > { %v673_v37 = vadd.f32 %v670_v36, %v646_v34 }
 0x33e   : > { %674 = vst.msk [vmem:[#allocation4 + $0x18] sm:$0xff] %vm317_vm2, %v673_v37  ;;  %v365_v39 = vpop.xlane.xlu1 %364 }
 0x33f   : > { %v366_v40 = vadd.f32 %v365_v39, %v362_v38 }
 0x341   : > { %368 = vst.msk [vmem:[#allocation3] sm:$0xff] %vm367_vm4, %v366_v40 }
 0x356   : > { %v553_v46 = vpop.permute.xlu1 %552 }
 0x357   : > { %v555_v47 = vmul.f32 %v553_v46, %v549_v45 }
 0x38b   : > { %v545_v43 = vpop.xlane.xlu2 %544 }
 0x38c   : > { %v546_v44 = vadd.f32 %v545_v43, %v542_v42 }
 0x38e   : > { %547 = vst.msk [vmem:[#allocation3 + $0x10] sm:$0xff] %vm367_vm4, %v546_v44 }
 0x399   : > { %679 = sbr.rel (%p919_p8) target bundleno = 1177 (0x499), region = 40 }
 0x39a   : > { %v579_v48 = vpop.f32.mrf.mxu3 }
 0x39b   : > { %v582_v49 = vadd.f32 %v579_v48, %v555_v47 }
 0x39d   : > { %583 = vst.msk [vmem:[#allocation4 + $0x10] sm:$0xff] %vm317_vm2, %v582_v49 }
 0x39e   : > { %v759_v50 = vld [vmem:[#allocation3 + $0x18] sm:$0xff]  ;;  %v703_v51 = vld [vmem:[#allocation3 + $0x8] sm:$0xff]  ;;  %v680_v52 = vld [vmem:[#allocation3] sm:$0xff]  ;;  %v1015_v53 = vmov 0  }
 0x39f   : > { %976 = vset.pattern.permute.xlu1 %v1015_v53  ;;  %977 = vrcp.f32 %v759_v50  ;;  %975 = vset.pattern.permute.xlu0 %v1015_v53  ;;  %v731_v54 = vld [vmem:[#allocation3 + $0x10] sm:$0xff]  ;;  %v769_v56 = vand.u32 2147483647, %v759_v50  ;;  %v771_v57 = vand.u32 2147483648, %v759_v50  ;;  %vm765_vm5 = vweird.f32 %v759_v50  ;;  %v774_v35 = vld [vmem:[#allocation4 + $0x18] sm:$0xff]  ;;  %v718_v36 = vld [vmem:[#allocation4 + $0x8] sm:$0xff] }
 0x3a0   : > { %979 = vrcp.f32 %v703_v51  ;;  %v713_v62 = vand.u32 2147483647, %v703_v51  ;;  %v715_v63 = vand.u32 2147483648, %v703_v51  ;;  %vm709_vm7 = vweird.f32 %v703_v51  ;;  %v695_v41 = vld [vmem:[#allocation4] sm:$0xff] }
 0x3a1   : > { %981 = vrcp.f32 %v680_v52  ;;  %vm1166_vm8 = vcmp.eq.f32.partialorder %v769_v56, 8.507059e+37  ;;  %v772_v4 = vor.u32 1.1754944e-38, %v771_v57  ;;  %vm686_vm10 = vweird.f32 %v680_v52 }
 0x3a2   : > { %983 = vrcp.f32 %v731_v54  ;;  %vm1175_vm12 = vcmp.eq.f32.partialorder %v713_v62, 8.507059e+37  ;;  %v716_v12 = vor.u32 1.1754944e-38, %v715_v63  ;;  %v690_v13 = vand.u32 2147483647, %v680_v52 }
 0x3a3   : > { %v692_v19 = vand.u32 2147483648, %v680_v52  ;;  %vm737_vm15 = vweird.f32 %v731_v54  ;;  %v743_v23 = vand.u32 2147483648, %v731_v54  ;;  %v741_v26 = vand.u32 2147483647, %v731_v54 }
 0x3a4   : > { %vm691_vm4 = vcmp.eq.f32.partialorder %v690_v13, 8.507059e+37  ;;  %v746_v42 = vld [vmem:[#allocation4 + $0x10] sm:$0xff] }
 0x3a5   : > { %v978_v55 = vpop.eup %977  ;;  %v693_v29 = vor.u32 1.1754944e-38, %v692_v19  ;;  %v744_v31 = vor.u32 1.1754944e-38, %v743_v23 }
 0x3a6   : > { %v980_v58 = vpop.eup %979  ;;  %v761_v59 = vmul.f32 %v978_v55, %v759_v50  ;;  %vm766_vm6 = vweird.f32 %v978_v55 }
 0x3a7   : > { %v982_v60 = vpop.eup %981  ;;  %v705_v61 = vmul.f32 %v980_v58, %v703_v51  ;;  %vm710_vm9 = vweird.f32 %v980_v58  ;;  %vm1171_vm11 = vmor %vm765_vm5, %vm766_vm6  ;;  %vm742_vm5 = vcmp.eq.f32.partialorder %v741_v26, 8.507059e+37  ;;  %vm729_vm6 = vcmask 130112  }
 0x3a8   : > { %v762_v0 = vsub.f32 1.0, %v761_v59  ;;  %v682_v1 = vmul.f32 %v982_v60, %v680_v52  ;;  %v984_v2 = vpop.eup %983  ;;  %vm1180_vm13 = vmor %vm709_vm7, %vm710_vm9  ;;  %vm687_vm14 = vweird.f32 %v982_v60  ;;  %vm757_vm7 = vcmask 195712  }
 0x3a9   : > { %v706_v5 = vsub.f32 1.0, %v705_v61  ;;  %v733_v8 = vmul.f32 %v984_v2, %v731_v54  ;;  %vm738_vm0 = vweird.f32 %v984_v2  ;;  %vm688_vm1 = vmor %vm686_vm10, %vm687_vm14 }
 0x3aa   : > { %v763_v6 = vmul.f32 %v978_v55, %v762_v0  ;;  %v683_v7 = vsub.f32 1.0, %v682_v1  ;;  %vm739_vm3 = vmor %vm737_vm15, %vm738_vm0 }
 0x3ab   : > { %v707_v10 = vmul.f32 %v980_v58, %v706_v5  ;;  %v734_v17 = vsub.f32 1.0, %v733_v8 }
 0x3ac   : > { %v764_v14 = vadd.f32 %v978_v55, %v763_v6  ;;  %v684_v16 = vmul.f32 %v982_v60, %v683_v7 }
 0x3ad   : > { %v708_v18 = vadd.f32 %v980_v58, %v707_v10  ;;  %v735_v22 = vmul.f32 %v984_v2, %v734_v17 }
 0x3ae   : > { %v768_v20 = vsel %vm1171_vm11, %v978_v55, %v764_v14  ;;  %v685_v21 = vadd.f32 %v982_v60, %v684_v16 }
 0x3af   : > { %v773_v24 = vsel %vm1166_vm8, %v772_v4, %v768_v20  ;;  %v712_v25 = vsel %vm1180_vm13, %v980_v58, %v708_v18  ;;  %v736_v28 = vadd.f32 %v984_v2, %v735_v22  ;;  %vm785_vm8 = vcmask 261312  }
 0x3b0   : > { %777 = vperm.xlu1 %976, %v773_v24   ;;  %v717_v27 = vsel %vm1175_vm12, %v716_v12, %v712_v25  ;;  %v689_v30 = vsel %vm688_vm1, %v982_v60, %v685_v21 }
 0x3b1   : > { %721 = vperm.xlu0 %975, %v717_v27   ;;  %v740_v32 = vsel %vm739_vm3, %v984_v2, %v736_v28  ;;  %v694_v33 = vsel %vm691_vm4, %v693_v29, %v689_v30 }
 0x3b2   : > { %v745_v34 = vsel %vm742_vm5, %v744_v31, %v740_v32 }
 0x3b8   : > { %698 = vperm.xlu1 %976, %v694_v33  }
 0x3b9   : > { %749 = vperm.xlu0 %975, %v745_v34  }
 0x422   : > { %v778_v37 = vpop.permute.xlu1 %777 }
 0x423   : > { %v780_v38 = vmul.f32 %v778_v37, %v774_v35  ;;  %v722_v39 = vpop.permute.xlu0 %721 }
 0x424   : > { %v724_v40 = vmul.f32 %v722_v39, %v718_v36 }
 0x425   : > { %782 = vrot.lane.b32.xlu0 %v780_v38, %s1016_s1 }
 0x426   : > { %726 = vrot.lane.b32.xlu2 %v724_v40, %s1017_s25 }
 0x42a   : > { %v699_v43 = vpop.permute.xlu1 %698 }
 0x42b   : > { %v701_v44 = vmul.f32 %v699_v43, %v695_v41  ;;  %v750_v45 = vpop.permute.xlu0 %749 }
 0x42c   : > { %v752_v46 = vmul.f32 %v750_v45, %v746_v42 }
 0x42d   : > { %702 = vst.msk [vmem:[%s1101_s18] sm:$0xff] %vm317_vm2, %v701_v44 }
 0x42e   : > { %754 = vrot.lane.b32.xlu2 %v752_v46, %s1018_s29 }
 0x480   : > { %v727_v47 = vpop.permute.xlu2 %726 }
 0x481   : > { %730 = vst.msk [vmem:[%s1101_s18] sm:$0xff] %vm729_vm6, %v727_v47 }
 0x488   : > { %v755_v48 = vpop.permute.xlu2 %754 }
 0x489   : > { %758 = vst.msk [vmem:[%s1101_s18] sm:$0xff] %vm757_vm7, %v755_v48 }
 0x497   : > { %v783_v49 = vpop.permute.xlu0 %782 }
 0x498   : > { %786 = vst.msk [vmem:[%s1101_s18] sm:$0xff] %vm785_vm8, %v783_v49 }
 0x499 PF: > { %s17_s24 = sadd.s32 1, %s1007_s24   ;;  %s1221_s22 = smov %s1003_s23 }
 0x49a   : > { %p14_p9 = scmp.ge.s32.totalorder %s17_s24, 4   ;;  %s1222_s23 = smov %s1224_s0 }
 0x49c   :  { %16 = sbr.rel (!%p14_p9) target bundleno = 3 (0x3), region = 85 }

</bundles_post_ra>
